<compile_context>
chip_gen: v7x
topology: tpu7x:2x2x1
jax: 0.10.0
libtpu: 0.0.40
codegen_flags: <defaults>
</compile_context>

<pallas_src>
import jax
import jax.numpy as jnp
from jax.experimental import pallas as pl
from jax.experimental.pallas import tpu as pltpu

# ---------------------------------------------------------------- config -----
DEPTH = 5                     # model_config 'depth'
FILTERS = 4                   # model_config 'filters' (small synthetic size)
CAT_CH = FILTERS
UP_CH = CAT_CH * DEPTH
NPLANES = [i * FILTERS for i in range(1, DEPTH + 1)]
BN_EPS = 1e-5
LANE = 128                    # TPU lane width


def _round_up(x, m):
    return (x + m - 1) // m * m


def _single_tensorcore_device():
    """True on single-TC chips (v5e/v6e): fold batch into one grid step.
    Multi-core chips (v4/v5p megacore, v7x) keep a per-batch parallel grid."""
    try:
        kind = jax.devices()[0].device_kind.lower()
    except Exception:
        return False
    return ("lite" in kind) or ("v5e" in kind) or ("v6e" in kind)


# ------------------------------------------------------- fused Pallas kernel -
def _fused_block_kernel(x_ref, w1_ref, sb1_ref, w2_ref, sb2_ref, o_ref,
                        halo2_ref):
    """Whole FeatureAggregationBlock for a block of NB batch elements.

    x_ref   : (NB, Ht+2, Wt+2, Cin)  channel-packed branch inputs, pre-padded
                                     with the 1-px zero halo and zero channels
                                     up to the lane width (f32).
    w1_ref  : (9*Cin, Cp)            block-diagonal branch-conv weights,
                                     tap-major K, bf16.
    sb1_ref : (2, Cp)                folded BN scale (row 0) / shift (row 1).
    w2_ref  : (9*Cp, Cp)             Conv_out weights, tap-major K, bf16.
    sb2_ref : (2, Cp)                folded BN scale / shift for Conv_out.
    o_ref   : (NB, Ht, Wt, Cp)       f32 output (real channels are [:, :20]).
    halo2_ref: VMEM (NB, Ht+2, Wt+2, Cp) f32 scratch for the Conv_out halo.
    """
    NB, Ht, Wt, Cp = o_ref.shape
    Cin = x_ref.shape[-1]
    M = NB * Ht * Wt

    # ---- stage 1: all `depth` branch 3x3 convs as ONE block-diagonal conv,
    #      accumulated tap-by-tap (no materialized im2col buffer). -----------
    acc = jnp.zeros((M, Cp), jnp.float32)
    for t in range(9):
        dy, dx = divmod(t, 3)
        xt = x_ref[:, dy:dy + Ht, dx:dx + Wt, :].reshape(M, Cin)
        acc += jnp.dot(xt.astype(jnp.bfloat16),
                       w1_ref[t * Cin:(t + 1) * Cin, :],
                       preferred_element_type=jnp.float32)
    # folded BN + ReLU (f32 epilogue); padded columns have scale=shift=0 -> 0.
    agg = jnp.maximum(acc * sb1_ref[0:1, :] + sb1_ref[1:2, :], 0.0)

    # ---- halo for Conv_out: zero only the 1-px border, every step (cheap;
    #      a program_id==0 "zero once" guard would be unsafe when the batch
    #      grid is sharded across cores).  Interior gets the fresh features. --
    halo2_ref[:, 0:1, :, :] = jnp.zeros((NB, 1, Wt + 2, Cp), halo2_ref.dtype)
    halo2_ref[:, Ht + 1:Ht + 2, :, :] = jnp.zeros((NB, 1, Wt + 2, Cp),
                                                  halo2_ref.dtype)
    halo2_ref[:, :, 0:1, :] = jnp.zeros((NB, Ht + 2, 1, Cp), halo2_ref.dtype)
    halo2_ref[:, :, Wt + 1:Wt + 2, :] = jnp.zeros((NB, Ht + 2, 1, Cp),
                                                  halo2_ref.dtype)
    halo2_ref[:, 1:Ht + 1, 1:Wt + 1, :] = agg.reshape(NB, Ht, Wt, Cp)

    # ---- stage 2: Conv_out + BN + ReLU on the aggregated (ME.cat) features --
    acc2 = jnp.zeros((M, Cp), jnp.float32)
    for t in range(9):
        dy, dx = divmod(t, 3)
        at = halo2_ref[:, dy:dy + Ht, dx:dx + Wt, :].reshape(M, Cp)
        acc2 += jnp.dot(at.astype(jnp.bfloat16),
                        w2_ref[t * Cp:(t + 1) * Cp, :],
                        preferred_element_type=jnp.float32)
    out = jnp.maximum(acc2 * sb2_ref[0:1, :] + sb2_ref[1:2, :], 0.0)
    o_ref[...] = out.reshape(NB, Ht, Wt, Cp).astype(o_ref.dtype)


def _fused_block_call(packed, w1, sb1, w2, sb2):
    N, Hp, Wp, Cin = packed.shape          # Hp = Ht+2, Wp = Wt+2 (pre-padded)
    Ht, Wt = Hp - 2, Wp - 2
    Cp = w1.shape[1]

    # Batch handling per generation: fold on single-TC chips (M = N*Ht*Wt),
    # keep a parallel per-batch grid on multi-core chips (v4/v5p/v7x).
    NB = N if _single_tensorcore_device() else 1
    grid = (N // NB,)

    return pl.pallas_call(
        _fused_block_kernel,
        out_shape=jax.ShapeDtypeStruct((N, Ht, Wt, Cp), jnp.float32),
        grid=grid,
        in_specs=[
            pl.BlockSpec((NB, Hp, Wp, Cin), lambda b: (b, 0, 0, 0)),
            pl.BlockSpec((9 * Cin, Cp), lambda b: (0, 0)),
            pl.BlockSpec((2, Cp), lambda b: (0, 0)),
            pl.BlockSpec((9 * Cp, Cp), lambda b: (0, 0)),
            pl.BlockSpec((2, Cp), lambda b: (0, 0)),
        ],
        out_specs=pl.BlockSpec((NB, Ht, Wt, Cp), lambda b: (b, 0, 0, 0)),
        scratch_shapes=[
            pltpu.VMEM((NB, Hp, Wp, Cp), jnp.float32),
        ],
        compiler_params=pltpu.CompilerParams(
            dimension_semantics=("parallel",),
            vmem_limit_bytes=32 * 1024 * 1024),
    )(packed, w1, sb1, w2, sb2)


# ------------------------------------------------------------ glue prep ops --
def maxpool(x, s):
    """MinkowskiMaxPooling dense analog (wrapper prep; fused by XLA)."""
    N, H, W, C = x.shape
    return jnp.max(x.reshape(N, H // s, s, W // s, s, C), axis=(2, 4))


def unpool(x, s):
    """MinkowskiPoolingTranspose dense analog: nearest-neighbour unpooling."""
    x = jnp.repeat(x, s, axis=1)
    return jnp.repeat(x, s, axis=2)


# ------------------------------------------------------------ parameters -----
def init_params(key):
    def conv_w(k, cin, cout):
        return 0.1 * jax.random.normal(k, (3, 3, cin, cout), jnp.float32)

    def bn(k, c):
        k1, k2, k3, k4 = jax.random.split(k, 4)
        gamma = 1.0 + 0.1 * jax.random.normal(k1, (c,), jnp.float32)
        beta = 0.1 * jax.random.normal(k2, (c,), jnp.float32)
        mean = 0.1 * jax.random.normal(k3, (c,), jnp.float32)
        var = jnp.abs(1.0 + 0.1 * jax.random.normal(k4, (c,), jnp.float32))
        scale = gamma / jnp.sqrt(var + BN_EPS)
        shift = beta - mean * scale
        return scale, shift

    keys = jax.random.split(key, 2 * DEPTH + 4)
    params = {"encod": []}
    for i, n in enumerate(NPLANES):
        w = conv_w(keys[2 * i], n, CAT_CH)
        s, sh = bn(keys[2 * i + 1], CAT_CH)
        params["encod"].append((w, s, sh))
    w = conv_w(keys[2 * DEPTH], UP_CH, CAT_CH)
    s, sh = bn(keys[2 * DEPTH + 1], CAT_CH)
    params["decod"] = (w, s, sh)
    w = conv_w(keys[2 * DEPTH + 2], UP_CH, UP_CH)
    s, sh = bn(keys[2 * DEPTH + 3], UP_CH)
    params["out"] = (w, s, sh)
    return params


# -------------------------------------------------------- fused forward ------
def feature_aggregation_fused(params, encoder_tensors, decoder_tensors, final):
    """FeatureAggregationBlock.forward: prep in wrapper, all convs in 1 kernel."""
    decoder_id = 1 + len(decoder_tensors)
    encoder_id = DEPTH - decoder_id - 1

    # Branch order == ME.cat order produced by the reference forward's inserts:
    #   [final, dec_0, ..., dec_{nd-1}, enc_{eid}, enc_{eid-1}, ..., enc_0]
    branches = []
    branches.append((unpool(final, 2 ** decoder_id),) + params["encod"][-1])
    for i, t in enumerate(decoder_tensors):
        branches.append((unpool(t, 2 ** (decoder_id - 1 - i)),) + params["decod"])
    branches.append((encoder_tensors[encoder_id],) + params["encod"][encoder_id])
    for i in range(encoder_id - 1, -1, -1):
        branches.append(
            (maxpool(encoder_tensors[i], 2 ** (encoder_id - i)),)
            + params["encod"][i])

    nb = len(branches)                      # == DEPTH
    Cagg = nb * CAT_CH                      # == UP_CH
    Ctot = sum(b[0].shape[-1] for b in branches)
    Cin_pad = _round_up(Ctot, LANE)         # lane-dense packed input channels
    Cpad = _round_up(Cagg, LANE)            # lane-dense agg / output channels

    # Channel-pack the branch inputs, add the 1-px zero halo (== SAME conv
    # padding) and zero-pad channels to the lane width.  All of this fuses
    # into the single producer of the packed tensor feeding the Pallas call.
    packed = jnp.concatenate([b[0] for b in branches], axis=-1)  # (N,Ht,Wt,Ctot)
    packed = jnp.pad(packed, ((0, 0), (1, 1), (1, 1), (0, Cin_pad - Ctot)))

    # Block-diagonal stage-1 weight (tap-major K), zero-padded, bf16:
    #   row ((3*dy+dx)*Cin_pad + off_j + c), col (j*CAT_CH + o) = w_j[dy,dx,c,o]
    tap_blocks = []
    for t in range(9):
        rows = []
        for j, (_, w, _, _) in enumerate(branches):
            cin = w.shape[2]
            blk = jnp.zeros((cin, Cpad), jnp.float32)
            blk = blk.at[:, j * CAT_CH:(j + 1) * CAT_CH].set(
                w.reshape(9, cin, CAT_CH)[t])
            rows.append(blk)
        rows.append(jnp.zeros((Cin_pad - Ctot, Cpad), jnp.float32))
        tap_blocks.append(jnp.concatenate(rows, axis=0))
    w1 = jnp.concatenate(tap_blocks, axis=0).astype(jnp.bfloat16)  # (9*Cin_pad, Cpad)

    s1 = jnp.zeros((Cpad,), jnp.float32).at[:Cagg].set(
        jnp.concatenate([b[2] for b in branches]))
    b1 = jnp.zeros((Cpad,), jnp.float32).at[:Cagg].set(
        jnp.concatenate([b[3] for b in branches]))
    sb1 = jnp.stack([s1, b1])                                      # (2, Cpad)

    w_out, s_out, b_out = params["out"]
    w2 = jnp.zeros((9, Cpad, Cpad), jnp.float32).at[:, :Cagg, :Cagg].set(
        w_out.reshape(9, Cagg, Cagg))
    w2 = w2.reshape(9 * Cpad, Cpad).astype(jnp.bfloat16)           # (9*Cpad, Cpad)
    s2 = jnp.zeros((Cpad,), jnp.float32).at[:Cagg].set(s_out)
    b2 = jnp.zeros((Cpad,), jnp.float32).at[:Cagg].set(b_out)
    sb2 = jnp.stack([s2, b2])                                      # (2, Cpad)

    out = _fused_block_call(packed, w1, sb1, w2, sb2)
    return out[..., :Cagg]


# ------------------------------------------------------ pure-JAX reference ---
def _ref_conv(x, w, scale, shift):
    y = jax.lax.conv_general_dilated(
        x, w, window_strides=(1, 1), padding="SAME",
        dimension_numbers=("NHWC", "HWIO", "NHWC"))
    return jnp.maximum(y * scale + shift, 0.0)


def feature_aggregation_reference(params, encoder_tensors, decoder_tensors, final):
    """Op-for-op mirror of the PyTorch forward (ME.cat -> channel concat)."""
    agg = []
    decoder_id = 1 + len(decoder_tensors)
    encoder_id = DEPTH - decoder_id - 1

    for i in range(0, encoder_id):
        t = maxpool(encoder_tensors[i], 2 ** (encoder_id - i))
        w, s, sh = params["encod"][i]
        agg.insert(0, _ref_conv(t, w, s, sh))

    w, s, sh = params["encod"][encoder_id]
    agg.insert(0, _ref_conv(encoder_tensors[encoder_id], w, s, sh))

    t = unpool(final, 2 ** decoder_id)
    w, s, sh = params["encod"][-1]
    agg.insert(0, _ref_conv(t, w, s, sh))

    for i, t in enumerate(decoder_tensors):
        t = unpool(t, 2 ** (decoder_id - 1 - i))
        w, s, sh = params["decod"]
        agg.insert(i + 1, _ref_conv(t, w, s, sh))

    agg = jnp.concatenate(agg, axis=-1)
    w, s, sh = params["out"]
    return _ref_conv(agg, w, s, sh)


# ------------------------------------------------------------------ main -----
if __name__ == "__main__":
    key = jax.random.PRNGKey(0)
    kp, k1, k2, k3, k4, k5 = jax.random.split(key, 6)
    params = init_params(kp)

    N, S = 2, 16                          # batch, base (scale-0) spatial size
    num_dec = 2
    decoder_id = 1 + num_dec              # = 3
    encoder_id = DEPTH - decoder_id - 1   # = 1 -> target spatial size S // 2

    encoder_tensors = [
        jax.random.normal(k1, (N, S, S, NPLANES[0]), jnp.float32),
        jax.random.normal(k2, (N, S // 2, S // 2, NPLANES[1]), jnp.float32),
    ]
    final = jax.random.normal(
        k3, (N, S // 2 ** (DEPTH - 1), S // 2 ** (DEPTH - 1), UP_CH), jnp.float32)
    decoder_tensors = [
        jax.random.normal(k4, (N, S // 8, S // 8, UP_CH), jnp.float32),
        jax.random.normal(k5, (N, S // 4, S // 4, UP_CH), jnp.float32),
    ]

    fused = jax.jit(feature_aggregation_fused)
    out = fused(params, encoder_tensors, decoder_tensors, final)
    out = jax.block_until_ready(out)
    assert out.shape == (N, S // 2 ** encoder_id, S // 2 ** encoder_id, UP_CH)

    ref = feature_aggregation_reference(params, encoder_tensors, decoder_tensors,
                                        final)
    ref = jax.block_until_ready(ref)
    # bf16 MXU inputs with f32 accumulation -> 5e-2 tolerance is appropriate.
    assert jnp.allclose(out, ref, rtol=5e-2, atol=5e-2), "mismatch vs JAX reference"

    print("KERNEL_OK")
</pallas_src>

<mosaic_0001>
module attributes {stable_mosaic.version = 11 : i64} {
  func.func @_fused_block_kernel(%arg0: i32, %arg1: memref<1x10x10x128xf32, #tpu.memory_space<vmem>>, %arg2: memref<1152x128xbf16, #tpu.memory_space<vmem>>, %arg3: memref<2x128xf32, #tpu.memory_space<vmem>>, %arg4: memref<1152x128xbf16, #tpu.memory_space<vmem>>, %arg5: memref<2x128xf32, #tpu.memory_space<vmem>>, %arg6: memref<1x8x8x128xf32, #tpu.memory_space<vmem>>, %arg7: memref<1x10x10x128xf32, #tpu.memory_space<vmem>>) attributes {dimension_semantics = [#tpu.dimension_semantics<parallel>], iteration_bounds = array<i64: 2>, scalar_prefetch = 0 : i64, scratch_operands = 1 : i64, tpu.core_type = #tpu.core_type<tc>, window_params = [{transform_indices = @transform_0, window_bounds = array<i64: 1, 10, 10, 128>}, {pipeline_mode = #tpu.pipeline_mode<synchronous>, transform_indices = @transform_1, window_bounds = array<i64: 1152, 128>}, {pipeline_mode = #tpu.pipeline_mode<synchronous>, transform_indices = @transform_2, window_bounds = array<i64: 2, 128>}, {pipeline_mode = #tpu.pipeline_mode<synchronous>, transform_indices = @transform_3, window_bounds = array<i64: 1152, 128>}, {pipeline_mode = #tpu.pipeline_mode<synchronous>, transform_indices = @transform_4, window_bounds = array<i64: 2, 128>}, {transform_indices = @transform_5, window_bounds = array<i64: 1, 8, 8, 128>}]} {
    %cst = arith.constant 0.000000e+00 : f32
    %0 = vector.broadcast %cst : f32 to vector<64x128xf32>
    %c0 = arith.constant 0 : index
    %c0_0 = arith.constant 0 : index
    %c0_1 = arith.constant 0 : index
    %c0_2 = arith.constant 0 : index
    %1 = vector.load %arg1[%c0, %c0_0, %c0_1, %c0_2] : memref<1x10x10x128xf32, #tpu.memory_space<vmem>>, vector<1x8x8x128xf32>
    %2 = vector.shape_cast %1 : vector<1x8x8x128xf32> to vector<64x128xf32>
    %3 = arith.truncf %2 : vector<64x128xf32> to vector<64x128xbf16>
    %c0_3 = arith.constant 0 : index
    %c0_4 = arith.constant 0 : index
    %4 = vector.load %arg2[%c0_3, %c0_4] : memref<1152x128xbf16, #tpu.memory_space<vmem>>, vector<128x128xbf16>
    %cst_5 = arith.constant dense<0.000000e+00> : vector<64x128xf32>
    %5 = tpu.matmul %3, %4, %cst_5 {dimension_numbers = #tpu.dot_dimension_numbers<[1], [0], [0], [1], [0, 0, 1, 1], [], []>} : vector<64x128xbf16>, vector<128x128xbf16>, vector<64x128xf32> -> vector<64x128xf32>
    %6 = arith.addf %0, %5 : vector<64x128xf32>
    %c0_6 = arith.constant 0 : index
    %c0_7 = arith.constant 0 : index
    %c1 = arith.constant 1 : index
    %c0_8 = arith.constant 0 : index
    %7 = vector.load %arg1[%c0_6, %c0_7, %c1, %c0_8] : memref<1x10x10x128xf32, #tpu.memory_space<vmem>>, vector<1x8x8x128xf32>
    %8 = vector.shape_cast %7 : vector<1x8x8x128xf32> to vector<64x128xf32>
    %9 = arith.truncf %8 : vector<64x128xf32> to vector<64x128xbf16>
    %c128 = arith.constant 128 : index
    %c0_9 = arith.constant 0 : index
    %10 = vector.load %arg2[%c128, %c0_9] : memref<1152x128xbf16, #tpu.memory_space<vmem>>, vector<128x128xbf16>
    %cst_10 = arith.constant dense<0.000000e+00> : vector<64x128xf32>
    %11 = tpu.matmul %9, %10, %cst_10 {dimension_numbers = #tpu.dot_dimension_numbers<[1], [0], [0], [1], [0, 0, 1, 1], [], []>} : vector<64x128xbf16>, vector<128x128xbf16>, vector<64x128xf32> -> vector<64x128xf32>
    %12 = arith.addf %6, %11 : vector<64x128xf32>
    %c0_11 = arith.constant 0 : index
    %c0_12 = arith.constant 0 : index
    %c2 = arith.constant 2 : index
    %c0_13 = arith.constant 0 : index
    %13 = vector.load %arg1[%c0_11, %c0_12, %c2, %c0_13] : memref<1x10x10x128xf32, #tpu.memory_space<vmem>>, vector<1x8x8x128xf32>
    %14 = vector.shape_cast %13 : vector<1x8x8x128xf32> to vector<64x128xf32>
    %15 = arith.truncf %14 : vector<64x128xf32> to vector<64x128xbf16>
    %c256 = arith.constant 256 : index
    %c0_14 = arith.constant 0 : index
    %16 = vector.load %arg2[%c256, %c0_14] : memref<1152x128xbf16, #tpu.memory_space<vmem>>, vector<128x128xbf16>
    %cst_15 = arith.constant dense<0.000000e+00> : vector<64x128xf32>
    %17 = tpu.matmul %15, %16, %cst_15 {dimension_numbers = #tpu.dot_dimension_numbers<[1], [0], [0], [1], [0, 0, 1, 1], [], []>} : vector<64x128xbf16>, vector<128x128xbf16>, vector<64x128xf32> -> vector<64x128xf32>
    %18 = arith.addf %12, %17 : vector<64x128xf32>
    %c0_16 = arith.constant 0 : index
    %c1_17 = arith.constant 1 : index
    %c0_18 = arith.constant 0 : index
    %c0_19 = arith.constant 0 : index
    %19 = vector.load %arg1[%c0_16, %c1_17, %c0_18, %c0_19] : memref<1x10x10x128xf32, #tpu.memory_space<vmem>>, vector<1x8x8x128xf32>
    %20 = vector.shape_cast %19 : vector<1x8x8x128xf32> to vector<64x128xf32>
    %21 = arith.truncf %20 : vector<64x128xf32> to vector<64x128xbf16>
    %c384 = arith.constant 384 : index
    %c0_20 = arith.constant 0 : index
    %22 = vector.load %arg2[%c384, %c0_20] : memref<1152x128xbf16, #tpu.memory_space<vmem>>, vector<128x128xbf16>
    %cst_21 = arith.constant dense<0.000000e+00> : vector<64x128xf32>
    %23 = tpu.matmul %21, %22, %cst_21 {dimension_numbers = #tpu.dot_dimension_numbers<[1], [0], [0], [1], [0, 0, 1, 1], [], []>} : vector<64x128xbf16>, vector<128x128xbf16>, vector<64x128xf32> -> vector<64x128xf32>
    %24 = arith.addf %18, %23 : vector<64x128xf32>
    %c0_22 = arith.constant 0 : index
    %c1_23 = arith.constant 1 : index
    %c1_24 = arith.constant 1 : index
    %c0_25 = arith.constant 0 : index
    %25 = vector.load %arg1[%c0_22, %c1_23, %c1_24, %c0_25] : memref<1x10x10x128xf32, #tpu.memory_space<vmem>>, vector<1x8x8x128xf32>
    %26 = vector.shape_cast %25 : vector<1x8x8x128xf32> to vector<64x128xf32>
    %27 = arith.truncf %26 : vector<64x128xf32> to vector<64x128xbf16>
    %c512 = arith.constant 512 : index
    %c0_26 = arith.constant 0 : index
    %28 = vector.load %arg2[%c512, %c0_26] : memref<1152x128xbf16, #tpu.memory_space<vmem>>, vector<128x128xbf16>
    %cst_27 = arith.constant dense<0.000000e+00> : vector<64x128xf32>
    %29 = tpu.matmul %27, %28, %cst_27 {dimension_numbers = #tpu.dot_dimension_numbers<[1], [0], [0], [1], [0, 0, 1, 1], [], []>} : vector<64x128xbf16>, vector<128x128xbf16>, vector<64x128xf32> -> vector<64x128xf32>
    %30 = arith.addf %24, %29 : vector<64x128xf32>
    %c0_28 = arith.constant 0 : index
    %c1_29 = arith.constant 1 : index
    %c2_30 = arith.constant 2 : index
    %c0_31 = arith.constant 0 : index
    %31 = vector.load %arg1[%c0_28, %c1_29, %c2_30, %c0_31] : memref<1x10x10x128xf32, #tpu.memory_space<vmem>>, vector<1x8x8x128xf32>
    %32 = vector.shape_cast %31 : vector<1x8x8x128xf32> to vector<64x128xf32>
    %33 = arith.truncf %32 : vector<64x128xf32> to vector<64x128xbf16>
    %c640 = arith.constant 640 : index
    %c0_32 = arith.constant 0 : index
    %34 = vector.load %arg2[%c640, %c0_32] : memref<1152x128xbf16, #tpu.memory_space<vmem>>, vector<128x128xbf16>
    %cst_33 = arith.constant dense<0.000000e+00> : vector<64x128xf32>
    %35 = tpu.matmul %33, %34, %cst_33 {dimension_numbers = #tpu.dot_dimension_numbers<[1], [0], [0], [1], [0, 0, 1, 1], [], []>} : vector<64x128xbf16>, vector<128x128xbf16>, vector<64x128xf32> -> vector<64x128xf32>
    %36 = arith.addf %30, %35 : vector<64x128xf32>
    %c0_34 = arith.constant 0 : index
    %c2_35 = arith.constant 2 : index
    %c0_36 = arith.constant 0 : index
    %c0_37 = arith.constant 0 : index
    %37 = vector.load %arg1[%c0_34, %c2_35, %c0_36, %c0_37] : memref<1x10x10x128xf32, #tpu.memory_space<vmem>>, vector<1x8x8x128xf32>
    %38 = vector.shape_cast %37 : vector<1x8x8x128xf32> to vector<64x128xf32>
    %39 = arith.truncf %38 : vector<64x128xf32> to vector<64x128xbf16>
    %c768 = arith.constant 768 : index
    %c0_38 = arith.constant 0 : index
    %40 = vector.load %arg2[%c768, %c0_38] : memref<1152x128xbf16, #tpu.memory_space<vmem>>, vector<128x128xbf16>
    %cst_39 = arith.constant dense<0.000000e+00> : vector<64x128xf32>
    %41 = tpu.matmul %39, %40, %cst_39 {dimension_numbers = #tpu.dot_dimension_numbers<[1], [0], [0], [1], [0, 0, 1, 1], [], []>} : vector<64x128xbf16>, vector<128x128xbf16>, vector<64x128xf32> -> vector<64x128xf32>
    %42 = arith.addf %36, %41 : vector<64x128xf32>
    %c0_40 = arith.constant 0 : index
    %c2_41 = arith.constant 2 : index
    %c1_42 = arith.constant 1 : index
    %c0_43 = arith.constant 0 : index
    %43 = vector.load %arg1[%c0_40, %c2_41, %c1_42, %c0_43] : memref<1x10x10x128xf32, #tpu.memory_space<vmem>>, vector<1x8x8x128xf32>
    %44 = vector.shape_cast %43 : vector<1x8x8x128xf32> to vector<64x128xf32>
    %45 = arith.truncf %44 : vector<64x128xf32> to vector<64x128xbf16>
    %c896 = arith.constant 896 : index
    %c0_44 = arith.constant 0 : index
    %46 = vector.load %arg2[%c896, %c0_44] : memref<1152x128xbf16, #tpu.memory_space<vmem>>, vector<128x128xbf16>
    %cst_45 = arith.constant dense<0.000000e+00> : vector<64x128xf32>
    %47 = tpu.matmul %45, %46, %cst_45 {dimension_numbers = #tpu.dot_dimension_numbers<[1], [0], [0], [1], [0, 0, 1, 1], [], []>} : vector<64x128xbf16>, vector<128x128xbf16>, vector<64x128xf32> -> vector<64x128xf32>
    %48 = arith.addf %42, %47 : vector<64x128xf32>
    %c0_46 = arith.constant 0 : index
    %c2_47 = arith.constant 2 : index
    %c2_48 = arith.constant 2 : index
    %c0_49 = arith.constant 0 : index
    %49 = vector.load %arg1[%c0_46, %c2_47, %c2_48, %c0_49] : memref<1x10x10x128xf32, #tpu.memory_space<vmem>>, vector<1x8x8x128xf32>
    %50 = vector.shape_cast %49 : vector<1x8x8x128xf32> to vector<64x128xf32>
    %51 = arith.truncf %50 : vector<64x128xf32> to vector<64x128xbf16>
    %c1024 = arith.constant 1024 : index
    %c0_50 = arith.constant 0 : index
    %52 = vector.load %arg2[%c1024, %c0_50] : memref<1152x128xbf16, #tpu.memory_space<vmem>>, vector<128x128xbf16>
    %cst_51 = arith.constant dense<0.000000e+00> : vector<64x128xf32>
    %53 = tpu.matmul %51, %52, %cst_51 {dimension_numbers = #tpu.dot_dimension_numbers<[1], [0], [0], [1], [0, 0, 1, 1], [], []>} : vector<64x128xbf16>, vector<128x128xbf16>, vector<64x128xf32> -> vector<64x128xf32>
    %54 = arith.addf %48, %53 : vector<64x128xf32>
    %c0_52 = arith.constant 0 : index
    %c0_53 = arith.constant 0 : index
    %55 = vector.load %arg3[%c0_52, %c0_53] : memref<2x128xf32, #tpu.memory_space<vmem>>, vector<1x128xf32>
    %56 = vector.broadcast %55 : vector<1x128xf32> to vector<64x128xf32>
    %57 = arith.mulf %54, %56 : vector<64x128xf32>
    %c1_54 = arith.constant 1 : index
    %c0_55 = arith.constant 0 : index
    %58 = vector.load %arg3[%c1_54, %c0_55] : memref<2x128xf32, #tpu.memory_space<vmem>>, vector<1x128xf32>
    %59 = vector.broadcast %58 : vector<1x128xf32> to vector<64x128xf32>
    %60 = arith.addf %57, %59 : vector<64x128xf32>
    %cst_56 = arith.constant 0.000000e+00 : f32
    %61 = vector.broadcast %cst_56 : f32 to vector<64x128xf32>
    %62 = arith.maximumf %60, %61 : vector<64x128xf32>
    %cst_57 = arith.constant 0.000000e+00 : f32
    %63 = vector.broadcast %cst_57 : f32 to vector<1x1x10x128xf32>
    %c0_58 = arith.constant 0 : index
    %c0_59 = arith.constant 0 : index
    %c0_60 = arith.constant 0 : index
    %c0_61 = arith.constant 0 : index
    %64 = vector.load %arg7[%c0_58, %c0_59, %c0_60, %c0_61] : memref<1x10x10x128xf32, #tpu.memory_space<vmem>>, vector<1x1x10x128xf32>
    tpu.vector_store %arg7[%c0_58, %c0_59, %c0_60, %c0_61], %63 {strides = array<i32>} : memref<1x10x10x128xf32, #tpu.memory_space<vmem>>, vector<1x1x10x128xf32>,
    %cst_62 = arith.constant 0.000000e+00 : f32
    %65 = vector.broadcast %cst_62 : f32 to vector<1x1x10x128xf32>
    %c0_63 = arith.constant 0 : index
    %c9 = arith.constant 9 : index
    %c0_64 = arith.constant 0 : index
    %c0_65 = arith.constant 0 : index
    %66 = vector.load %arg7[%c0_63, %c9, %c0_64, %c0_65] : memref<1x10x10x128xf32, #tpu.memory_space<vmem>>, vector<1x1x10x128xf32>
    tpu.vector_store %arg7[%c0_63, %c9, %c0_64, %c0_65], %65 {strides = array<i32>} : memref<1x10x10x128xf32, #tpu.memory_space<vmem>>, vector<1x1x10x128xf32>,
    %cst_66 = arith.constant 0.000000e+00 : f32
    %67 = vector.broadcast %cst_66 : f32 to vector<1x10x1x128xf32>
    %c0_67 = arith.constant 0 : index
    %c0_68 = arith.constant 0 : index
    %c0_69 = arith.constant 0 : index
    %c0_70 = arith.constant 0 : index
    %68 = vector.load %arg7[%c0_67, %c0_68, %c0_69, %c0_70] : memref<1x10x10x128xf32, #tpu.memory_space<vmem>>, vector<1x10x1x128xf32>
    tpu.vector_store %arg7[%c0_67, %c0_68, %c0_69, %c0_70], %67 {strides = array<i32>} : memref<1x10x10x128xf32, #tpu.memory_space<vmem>>, vector<1x10x1x128xf32>,
    %cst_71 = arith.constant 0.000000e+00 : f32
    %69 = vector.broadcast %cst_71 : f32 to vector<1x10x1x128xf32>
    %c0_72 = arith.constant 0 : index
    %c0_73 = arith.constant 0 : index
    %c9_74 = arith.constant 9 : index
    %c0_75 = arith.constant 0 : index
    %70 = vector.load %arg7[%c0_72, %c0_73, %c9_74, %c0_75] : memref<1x10x10x128xf32, #tpu.memory_space<vmem>>, vector<1x10x1x128xf32>
    tpu.vector_store %arg7[%c0_72, %c0_73, %c9_74, %c0_75], %69 {strides = array<i32>} : memref<1x10x10x128xf32, #tpu.memory_space<vmem>>, vector<1x10x1x128xf32>,
    %71 = vector.shape_cast %62 : vector<64x128xf32> to vector<1x8x8x128xf32>
    %c0_76 = arith.constant 0 : index
    %c1_77 = arith.constant 1 : index
    %c1_78 = arith.constant 1 : index
    %c0_79 = arith.constant 0 : index
    %72 = vector.load %arg7[%c0_76, %c1_77, %c1_78, %c0_79] : memref<1x10x10x128xf32, #tpu.memory_space<vmem>>, vector<1x8x8x128xf32>
    tpu.vector_store %arg7[%c0_76, %c1_77, %c1_78, %c0_79], %71 {strides = array<i32>} : memref<1x10x10x128xf32, #tpu.memory_space<vmem>>, vector<1x8x8x128xf32>,
    %cst_80 = arith.constant 0.000000e+00 : f32
    %73 = vector.broadcast %cst_80 : f32 to vector<64x128xf32>
    %c0_81 = arith.constant 0 : index
    %c0_82 = arith.constant 0 : index
    %c0_83 = arith.constant 0 : index
    %c0_84 = arith.constant 0 : index
    %74 = vector.load %arg7[%c0_81, %c0_82, %c0_83, %c0_84] : memref<1x10x10x128xf32, #tpu.memory_space<vmem>>, vector<1x8x8x128xf32>
    %75 = vector.shape_cast %74 : vector<1x8x8x128xf32> to vector<64x128xf32>
    %76 = arith.truncf %75 : vector<64x128xf32> to vector<64x128xbf16>
    %c0_85 = arith.constant 0 : index
    %c0_86 = arith.constant 0 : index
    %77 = vector.load %arg4[%c0_85, %c0_86] : memref<1152x128xbf16, #tpu.memory_space<vmem>>, vector<128x128xbf16>
    %cst_87 = arith.constant dense<0.000000e+00> : vector<64x128xf32>
    %78 = tpu.matmul %76, %77, %cst_87 {dimension_numbers = #tpu.dot_dimension_numbers<[1], [0], [0], [1], [0, 0, 1, 1], [], []>} : vector<64x128xbf16>, vector<128x128xbf16>, vector<64x128xf32> -> vector<64x128xf32>
    %79 = arith.addf %73, %78 : vector<64x128xf32>
    %c0_88 = arith.constant 0 : index
    %c0_89 = arith.constant 0 : index
    %c1_90 = arith.constant 1 : index
    %c0_91 = arith.constant 0 : index
    %80 = vector.load %arg7[%c0_88, %c0_89, %c1_90, %c0_91] : memref<1x10x10x128xf32, #tpu.memory_space<vmem>>, vector<1x8x8x128xf32>
    %81 = vector.shape_cast %80 : vector<1x8x8x128xf32> to vector<64x128xf32>
    %82 = arith.truncf %81 : vector<64x128xf32> to vector<64x128xbf16>
    %c128_92 = arith.constant 128 : index
    %c0_93 = arith.constant 0 : index
    %83 = vector.load %arg4[%c128_92, %c0_93] : memref<1152x128xbf16, #tpu.memory_space<vmem>>, vector<128x128xbf16>
    %cst_94 = arith.constant dense<0.000000e+00> : vector<64x128xf32>
    %84 = tpu.matmul %82, %83, %cst_94 {dimension_numbers = #tpu.dot_dimension_numbers<[1], [0], [0], [1], [0, 0, 1, 1], [], []>} : vector<64x128xbf16>, vector<128x128xbf16>, vector<64x128xf32> -> vector<64x128xf32>
    %85 = arith.addf %79, %84 : vector<64x128xf32>
    %c0_95 = arith.constant 0 : index
    %c0_96 = arith.constant 0 : index
    %c2_97 = arith.constant 2 : index
    %c0_98 = arith.constant 0 : index
    %86 = vector.load %arg7[%c0_95, %c0_96, %c2_97, %c0_98] : memref<1x10x10x128xf32, #tpu.memory_space<vmem>>, vector<1x8x8x128xf32>
    %87 = vector.shape_cast %86 : vector<1x8x8x128xf32> to vector<64x128xf32>
    %88 = arith.truncf %87 : vector<64x128xf32> to vector<64x128xbf16>
    %c256_99 = arith.constant 256 : index
    %c0_100 = arith.constant 0 : index
    %89 = vector.load %arg4[%c256_99, %c0_100] : memref<1152x128xbf16, #tpu.memory_space<vmem>>, vector<128x128xbf16>
    %cst_101 = arith.constant dense<0.000000e+00> : vector<64x128xf32>
    %90 = tpu.matmul %88, %89, %cst_101 {dimension_numbers = #tpu.dot_dimension_numbers<[1], [0], [0], [1], [0, 0, 1, 1], [], []>} : vector<64x128xbf16>, vector<128x128xbf16>, vector<64x128xf32> -> vector<64x128xf32>
    %91 = arith.addf %85, %90 : vector<64x128xf32>
    %c0_102 = arith.constant 0 : index
    %c1_103 = arith.constant 1 : index
    %c0_104 = arith.constant 0 : index
    %c0_105 = arith.constant 0 : index
    %92 = vector.load %arg7[%c0_102, %c1_103, %c0_104, %c0_105] : memref<1x10x10x128xf32, #tpu.memory_space<vmem>>, vector<1x8x8x128xf32>
    %93 = vector.shape_cast %92 : vector<1x8x8x128xf32> to vector<64x128xf32>
    %94 = arith.truncf %93 : vector<64x128xf32> to vector<64x128xbf16>
    %c384_106 = arith.constant 384 : index
    %c0_107 = arith.constant 0 : index
    %95 = vector.load %arg4[%c384_106, %c0_107] : memref<1152x128xbf16, #tpu.memory_space<vmem>>, vector<128x128xbf16>
    %cst_108 = arith.constant dense<0.000000e+00> : vector<64x128xf32>
    %96 = tpu.matmul %94, %95, %cst_108 {dimension_numbers = #tpu.dot_dimension_numbers<[1], [0], [0], [1], [0, 0, 1, 1], [], []>} : vector<64x128xbf16>, vector<128x128xbf16>, vector<64x128xf32> -> vector<64x128xf32>
    %97 = arith.addf %91, %96 : vector<64x128xf32>
    %c0_109 = arith.constant 0 : index
    %c1_110 = arith.constant 1 : index
    %c1_111 = arith.constant 1 : index
    %c0_112 = arith.constant 0 : index
    %98 = vector.load %arg7[%c0_109, %c1_110, %c1_111, %c0_112] : memref<1x10x10x128xf32, #tpu.memory_space<vmem>>, vector<1x8x8x128xf32>
    %99 = vector.shape_cast %98 : vector<1x8x8x128xf32> to vector<64x128xf32>
    %100 = arith.truncf %99 : vector<64x128xf32> to vector<64x128xbf16>
    %c512_113 = arith.constant 512 : index
    %c0_114 = arith.constant 0 : index
    %101 = vector.load %arg4[%c512_113, %c0_114] : memref<1152x128xbf16, #tpu.memory_space<vmem>>, vector<128x128xbf16>
    %cst_115 = arith.constant dense<0.000000e+00> : vector<64x128xf32>
    %102 = tpu.matmul %100, %101, %cst_115 {dimension_numbers = #tpu.dot_dimension_numbers<[1], [0], [0], [1], [0, 0, 1, 1], [], []>} : vector<64x128xbf16>, vector<128x128xbf16>, vector<64x128xf32> -> vector<64x128xf32>
    %103 = arith.addf %97, %102 : vector<64x128xf32>
    %c0_116 = arith.constant 0 : index
    %c1_117 = arith.constant 1 : index
    %c2_118 = arith.constant 2 : index
    %c0_119 = arith.constant 0 : index
    %104 = vector.load %arg7[%c0_116, %c1_117, %c2_118, %c0_119] : memref<1x10x10x128xf32, #tpu.memory_space<vmem>>, vector<1x8x8x128xf32>
    %105 = vector.shape_cast %104 : vector<1x8x8x128xf32> to vector<64x128xf32>
    %106 = arith.truncf %105 : vector<64x128xf32> to vector<64x128xbf16>
    %c640_120 = arith.constant 640 : index
    %c0_121 = arith.constant 0 : index
    %107 = vector.load %arg4[%c640_120, %c0_121] : memref<1152x128xbf16, #tpu.memory_space<vmem>>, vector<128x128xbf16>
    %cst_122 = arith.constant dense<0.000000e+00> : vector<64x128xf32>
    %108 = tpu.matmul %106, %107, %cst_122 {dimension_numbers = #tpu.dot_dimension_numbers<[1], [0], [0], [1], [0, 0, 1, 1], [], []>} : vector<64x128xbf16>, vector<128x128xbf16>, vector<64x128xf32> -> vector<64x128xf32>
    %109 = arith.addf %103, %108 : vector<64x128xf32>
    %c0_123 = arith.constant 0 : index
    %c2_124 = arith.constant 2 : index
    %c0_125 = arith.constant 0 : index
    %c0_126 = arith.constant 0 : index
    %110 = vector.load %arg7[%c0_123, %c2_124, %c0_125, %c0_126] : memref<1x10x10x128xf32, #tpu.memory_space<vmem>>, vector<1x8x8x128xf32>
    %111 = vector.shape_cast %110 : vector<1x8x8x128xf32> to vector<64x128xf32>
    %112 = arith.truncf %111 : vector<64x128xf32> to vector<64x128xbf16>
    %c768_127 = arith.constant 768 : index
    %c0_128 = arith.constant 0 : index
    %113 = vector.load %arg4[%c768_127, %c0_128] : memref<1152x128xbf16, #tpu.memory_space<vmem>>, vector<128x128xbf16>
    %cst_129 = arith.constant dense<0.000000e+00> : vector<64x128xf32>
    %114 = tpu.matmul %112, %113, %cst_129 {dimension_numbers = #tpu.dot_dimension_numbers<[1], [0], [0], [1], [0, 0, 1, 1], [], []>} : vector<64x128xbf16>, vector<128x128xbf16>, vector<64x128xf32> -> vector<64x128xf32>
    %115 = arith.addf %109, %114 : vector<64x128xf32>
    %c0_130 = arith.constant 0 : index
    %c2_131 = arith.constant 2 : index
    %c1_132 = arith.constant 1 : index
    %c0_133 = arith.constant 0 : index
    %116 = vector.load %arg7[%c0_130, %c2_131, %c1_132, %c0_133] : memref<1x10x10x128xf32, #tpu.memory_space<vmem>>, vector<1x8x8x128xf32>
    %117 = vector.shape_cast %116 : vector<1x8x8x128xf32> to vector<64x128xf32>
    %118 = arith.truncf %117 : vector<64x128xf32> to vector<64x128xbf16>
    %c896_134 = arith.constant 896 : index
    %c0_135 = arith.constant 0 : index
    %119 = vector.load %arg4[%c896_134, %c0_135] : memref<1152x128xbf16, #tpu.memory_space<vmem>>, vector<128x128xbf16>
    %cst_136 = arith.constant dense<0.000000e+00> : vector<64x128xf32>
    %120 = tpu.matmul %118, %119, %cst_136 {dimension_numbers = #tpu.dot_dimension_numbers<[1], [0], [0], [1], [0, 0, 1, 1], [], []>} : vector<64x128xbf16>, vector<128x128xbf16>, vector<64x128xf32> -> vector<64x128xf32>
    %121 = arith.addf %115, %120 : vector<64x128xf32>
    %c0_137 = arith.constant 0 : index
    %c2_138 = arith.constant 2 : index
    %c2_139 = arith.constant 2 : index
    %c0_140 = arith.constant 0 : index
    %122 = vector.load %arg7[%c0_137, %c2_138, %c2_139, %c0_140] : memref<1x10x10x128xf32, #tpu.memory_space<vmem>>, vector<1x8x8x128xf32>
    %123 = vector.shape_cast %122 : vector<1x8x8x128xf32> to vector<64x128xf32>
    %124 = arith.truncf %123 : vector<64x128xf32> to vector<64x128xbf16>
    %c1024_141 = arith.constant 1024 : index
    %c0_142 = arith.constant 0 : index
    %125 = vector.load %arg4[%c1024_141, %c0_142] : memref<1152x128xbf16, #tpu.memory_space<vmem>>, vector<128x128xbf16>
    %cst_143 = arith.constant dense<0.000000e+00> : vector<64x128xf32>
    %126 = tpu.matmul %124, %125, %cst_143 {dimension_numbers = #tpu.dot_dimension_numbers<[1], [0], [0], [1], [0, 0, 1, 1], [], []>} : vector<64x128xbf16>, vector<128x128xbf16>, vector<64x128xf32> -> vector<64x128xf32>
    %127 = arith.addf %121, %126 : vector<64x128xf32>
    %c0_144 = arith.constant 0 : index
    %c0_145 = arith.constant 0 : index
    %128 = vector.load %arg5[%c0_144, %c0_145] : memref<2x128xf32, #tpu.memory_space<vmem>>, vector<1x128xf32>
    %129 = vector.broadcast %128 : vector<1x128xf32> to vector<64x128xf32>
    %130 = arith.mulf %127, %129 : vector<64x128xf32>
    %c1_146 = arith.constant 1 : index
    %c0_147 = arith.constant 0 : index
    %131 = vector.load %arg5[%c1_146, %c0_147] : memref<2x128xf32, #tpu.memory_space<vmem>>, vector<1x128xf32>
    %132 = vector.broadcast %131 : vector<1x128xf32> to vector<64x128xf32>
    %133 = arith.addf %130, %132 : vector<64x128xf32>
    %cst_148 = arith.constant 0.000000e+00 : f32
    %134 = vector.broadcast %cst_148 : f32 to vector<64x128xf32>
    %135 = arith.maximumf %133, %134 : vector<64x128xf32>
    %136 = vector.shape_cast %135 : vector<64x128xf32> to vector<1x8x8x128xf32>
    %c0_149 = arith.constant 0 : index
    %c0_150 = arith.constant 0 : index
    %c0_151 = arith.constant 0 : index
    %c0_152 = arith.constant 0 : index
    %137 = vector.load %arg6[%c0_149, %c0_150, %c0_151, %c0_152] : memref<1x8x8x128xf32, #tpu.memory_space<vmem>>, vector<1x8x8x128xf32>
    tpu.vector_store %arg6[%c0_149, %c0_150, %c0_151, %c0_152], %136 {strides = array<i32>} : memref<1x8x8x128xf32, #tpu.memory_space<vmem>>, vector<1x8x8x128xf32>,
    return
  }
  func.func @transform_0(%arg0: i32) -> (i32, i32, i32, i32) {
    %c0_i32 = arith.constant 0 : i32
    %c0_i32_0 = arith.constant 0 : i32
    %c0_i32_1 = arith.constant 0 : i32
    %c0_i32_2 = arith.constant 0 : i32
    return %arg0, %c0_i32, %c0_i32_0, %c0_i32_1 : i32, i32, i32, i32
  }
  func.func @transform_1(%arg0: i32) -> (i32, i32) {
    %c0_i32 = arith.constant 0 : i32
    %c0_i32_0 = arith.constant 0 : i32
    %c0_i32_1 = arith.constant 0 : i32
    return %c0_i32, %c0_i32_0 : i32, i32
  }
  func.func @transform_2(%arg0: i32) -> (i32, i32) {
    %c0_i32 = arith.constant 0 : i32
    %c0_i32_0 = arith.constant 0 : i32
    %c0_i32_1 = arith.constant 0 : i32
    return %c0_i32, %c0_i32_0 : i32, i32
  }
  func.func @transform_3(%arg0: i32) -> (i32, i32) {
    %c0_i32 = arith.constant 0 : i32
    %c0_i32_0 = arith.constant 0 : i32
    %c0_i32_1 = arith.constant 0 : i32
    return %c0_i32, %c0_i32_0 : i32, i32
  }
  func.func @transform_4(%arg0: i32) -> (i32, i32) {
    %c0_i32 = arith.constant 0 : i32
    %c0_i32_0 = arith.constant 0 : i32
    %c0_i32_1 = arith.constant 0 : i32
    return %c0_i32, %c0_i32_0 : i32, i32
  }
  func.func @transform_5(%arg0: i32) -> (i32, i32, i32, i32) {
    %c0_i32 = arith.constant 0 : i32
    %c0_i32_0 = arith.constant 0 : i32
    %c0_i32_1 = arith.constant 0 : i32
    %c0_i32_2 = arith.constant 0 : i32
    return %arg0, %c0_i32, %c0_i32_0, %c0_i32_1 : i32, i32, i32, i32
  }
}

</mosaic_0001>

<bundles_post_ra>
// kernel: feature_aggregation_fused.1
= control target key start
LH: loop header
LB: loop body
LE: loop exit
PB: predicated region body
PF: predicated region fallthrough
CT: control target
= control target key end

     0   :  { %10 = vsyncpa [#allocation4], 0  ;;  %s5222_s0 = inlined_call_operand.vmem [shape: f32[2,10,10,128], index: 0, kind: input, shape index: {}]   ;;  %s5223_s1 = inlined_call_operand.vmem [shape: bf16[1152,128], index: 1, kind: input, shape index: {}]   ;;  %s5224_s2 = inlined_call_operand.vmem [shape: f32[2,128], index: 2, kind: input, shape index: {}]   ;;  %s5225_s3 = inlined_call_operand.vmem [shape: bf16[1152,128], index: 3, kind: input, shape index: {}]   ;;  %s5226_s4 = inlined_call_operand.vmem [shape: f32[2,128], index: 4, kind: input, shape index: {}]   ;;  %s5227_s5 = inlined_call_operand.hbm [shape: f32[2,8,8,128], index: 5, kind: output, shape index: {}]  }
   0x1   :  { %12 = vsyncpa [#allocation4 + $0x1], 0  ;;  %s4332_s18 = smov 0   ;;  %s4334_s19 = smov 0  }
   0x2   :  { %s4336_s20 = smov 0   ;;  %s4338_s21 = smov 0  }
   0x3 LB: > { %s4353_s22 = sadd.s32 4294967295, %s4296_s21   ;;  %s3063_s23 = sadd.s32 4294967294, %s4296_s21   ;;  %s4296_s21 = sphi %s4338_s21, %s5233_s21   ;;  %s4292_s20 = sphi %s4336_s20, %s5232_s20   ;;  %s4288_s19 = sphi %s4334_s19, %s5231_s19   ;;  %s4284_s18 = sphi %s4332_s18, %s5230_s18  }
   0x4   : > { %s4357_s24 = sadd.s32 1, %s4296_s21   ;;  %s135_s25 = sadd.s32 1, %s4292_s20 }
   0x5   : > { %s132_s26 = ssub.s32 %s4296_s21, %s4357_s24  ;;  %p145_p0 = scmp.ne.s32.totalorder %s4292_s20, %s4288_s19 }
   0x6   : > { %p133_p1 = scmp.eq.s32.totalorder %s132_s26, 0  ;;  %p146_p2 = scmp.eq.s32.totalorder %s4353_s22, 1 }
   0x7   : > { %p151_p3 = scmp.ne.s32.totalorder %s4288_s19, %s4284_s18  ;;  %p152_p4 = scmp.eq.s32.totalorder %s3063_s23, 1 }
   0x8   : > { %s4368_s27 = scalar_select %p133_p1, %s4292_s20, %s135_s25  }
   0x9   : > { %p4370_p5 = por %p146_p2, %p145_p0  ;;  %p4374_p6 = por %p152_p4, %p151_p3 }
   0xa   : > { %p3066_p7 = scmp.ge.s32.totalorder %s4296_s21, 1  ;;  %p190_p8 = scmp.lt.s32.totalorder %s4296_s21, 3 }
   0xc   : > { %p191_p9 = pnand %p3066_p7, %p190_p8 }
   0xd   : > { %v4090_v0 = vld [vmem:[%s5223_s1 + $0x40] sm:$0xff] (!%p191_p9)   ;;  %p218_p10 = scmp.lt.s32.totalorder (!%p191_p9), %s4353_s22, 1  ;;  %v4091_v1 = vld [vmem:[%s5223_s1 + $0x48] sm:$0xff] (!%p191_p9)   ;;  %v4092_v2 = vld [vmem:[%s5223_s1 + $0x50] sm:$0xff] (!%p191_p9)   ;;  %s215_s7 = sand.u32 (!%p191_p9), 1, %s4288_s19  }
   0xe   : > { %194 = sbr.rel (%p191_p9) target bundleno = 1025 (0x401), region = 40  ;;  %3487 = vmatprep.subr.bf16.mxu0 (!%p191_p9), %v4090_v0  ;;  %v4093_v3 = vld [vmem:[%s5223_s1 + $0x58] sm:$0xff] (!%p191_p9)   ;;  %v4094_v7 = vld [vmem:[%s5223_s1 + $0x60] sm:$0xff] (!%p191_p9)   ;;  %v4095_v8 = vld [vmem:[%s5223_s1 + $0x68] sm:$0xff] (!%p191_p9)   ;;  %s3270_s14 = sshll.u32 (!%p191_p9), %s4353_s22, 10 }
   0xf   : > { %3488 = vmatpush3.bf16.msra.mxu0 (!%p191_p9), %v4090_v0  ;;  %v4096_v9 = vld [vmem:[%s5223_s1 + $0x70] sm:$0xff] (!%p191_p9)   ;;  %v4097_v10 = vld [vmem:[%s5223_s1 + $0x78] sm:$0xff] (!%p191_p9)   ;;  %v4098_v11 = vld [vmem:[%s5223_s1] sm:$0xff] (!%p191_p9)   ;;  %s5175_s23 = scalar_lea.hbm (!%p191_p9), %s5227_s5, %s3270_s14  ;;  %s4299_s26 = smov (!%p191_p9), [#allocation3]  }
  0x10   : > { %3489 = vmatprep.subr.bf16.mxu0 (!%p191_p9), %v4091_v1  ;;  %v4099_v19 = vld [vmem:[%s5223_s1 + $0x8] sm:$0xff] (!%p191_p9)   ;;  %v4100_v21 = vld [vmem:[%s5223_s1 + $0x10] sm:$0xff] (!%p191_p9)   ;;  %v4101_v28 = vld [vmem:[%s5223_s1 + $0x18] sm:$0xff] (!%p191_p9)   ;;  %s4238_s30 = sshll.u32 (!%p191_p9), %s4299_s26, 4  ;;  %s4239_s30 = int_to_ptr.vmem [resolvable:$false] %s4238_s30 }
  0x11   : > { %v4102_v29 = vld [vmem:[%s5223_s1 + $0x20] sm:$0xff] (!%p191_p9)   ;;  %v4103_v30 = vld [vmem:[%s5223_s1 + $0x28] sm:$0xff] (!%p191_p9)   ;;  %v4104_v31 = vld [vmem:[%s5223_s1 + $0x30] sm:$0xff] (!%p191_p9)   ;;  %s4240_s6 = scalar_lea.vmem (!%p191_p9), %s4239_s30, 2048 }
  0x12   : > { %v4105_v33 = vld [vmem:[%s5223_s1 + $0x38] sm:$0xff] (!%p191_p9)   ;;  %v4106_v36 = vld [vmem:[%s5223_s1 + $0x80] sm:$0xff] (!%p191_p9)   ;;  %v4107_v43 = vld [vmem:[%s5223_s1 + $0x88] sm:$0xff] (!%p191_p9)  }
  0x13   : > { %3490 = vmatpush3.bf16.msra.mxu0 (!%p191_p9), %v4091_v1  ;;  %v4108_v50 = vld [vmem:[%s5223_s1 + $0x90] sm:$0xff] (!%p191_p9)   ;;  %v4109_v53 = vld [vmem:[%s5223_s1 + $0x98] sm:$0xff] (!%p191_p9)   ;;  %v4110_v55 = vld [vmem:[%s5223_s1 + $0xa0] sm:$0xff] (!%p191_p9)  }
  0x14   : > { %3491 = vmatprep.subr.bf16.mxu0 (!%p191_p9), %v4092_v2  ;;  %v4111_v56 = vld [vmem:[%s5223_s1 + $0xa8] sm:$0xff] (!%p191_p9)   ;;  %v4112_v57 = vld [vmem:[%s5223_s1 + $0xb0] sm:$0xff] (!%p191_p9)   ;;  %v4113_v61 = vld [vmem:[%s5223_s1 + $0xb8] sm:$0xff] (!%p191_p9)  }
  0x15   : > { %s219_s9 = scalar_select %p218_p10, %s4353_s22, 1  ;;  %v4114_v62 = vld [vmem:[%s5223_s1 + $0xc0] sm:$0xff]   ;;  %v4115_v0 = vld [vmem:[%s5223_s1 + $0xc8] sm:$0xff]  }
  0x16   : > { %s5181_s22 = scalar_lea.sflag [#allocation4], %s215_s7 }
  0x17   : > { %s4047_s12 = smul.u32 160, %s219_s9  ;;  %3492 = vmatpush3.bf16.msra.mxu0 %v4092_v2  ;;  %v4116_v2 = vld [vmem:[%s5223_s1 + $0xd0] sm:$0xff]  }
  0x18   : > { %3493 = vmatprep.subr.bf16.mxu0 %v4093_v3 }
  0x19   : > { %s4394_s15 = scalar_lea.vmem %s5222_s0, %s4047_s12  ;;  %s3067_s12 = sshll.u32 %s215_s7, 6 }
  0x1a   : > { %v252_v4 = vld [vmem:[%s4394_s15 + $0x1] sm:$0xff]  ;;  %v4401_v5 = vld [vmem:[%s4394_s15 + $0x11] sm:$0xff]  ;;  %s217_s13 = scalar_lea.vmem [#allocation3], %s3067_s12 }
  0x1b   : > { %v260_v6 = vpack.c.bf16 %v4401_v5, %v252_v4  ;;  %3494 = vmatpush3.bf16.msra.mxu0 %v4093_v3  ;;  %v4420_v12 = vld [vmem:[%s4394_s15 + $0x21] sm:$0xff]  ;;  %v4423_v13 = vld [vmem:[%s4394_s15 + $0x31] sm:$0xff] }
  0x1c   : > { %3495 = vmatprep.subr.bf16.mxu0 %v4094_v7  ;;  %v4426_v14 = vld [vmem:[%s4394_s15 + $0x41] sm:$0xff]  ;;  %v4429_v15 = vld [vmem:[%s4394_s15 + $0x51] sm:$0xff]  ;;  %v4433_v16 = vpack.c.bf16 %v4423_v13, %v4420_v12  ;;  %v813_v18 = vpack.c.bf16 %v4420_v12, %v4401_v5 }
  0x1d   : > { %3503 = vmatprep.mubr.bf16.mxu0 %v260_v6  ;;  %v4437_v17 = vpack.c.bf16 %v4429_v15, %v4426_v14  ;;  %v814_v20 = vpack.c.bf16 %v4426_v14, %v4423_v13  ;;  %v4451_v22 = vld [vmem:[%s4394_s15 + $0x61] sm:$0xff]  ;;  %v4455_v23 = vld [vmem:[%s4394_s15 + $0x71] sm:$0xff] }
  0x1e   : > { %v224_v24 = vld [vmem:[%s4394_s15] sm:$0xff]  ;;  %v4459_v25 = vld [vmem:[%s4394_s15 + $0x10] sm:$0xff]  ;;  %v4463_v26 = vpack.c.bf16 %v4455_v23, %v4451_v22  ;;  %v815_v32 = vpack.c.bf16 %v4451_v22, %v4429_v15  ;;  %v4117_v6 = vld [vmem:[%s5223_s1 + $0xd8] sm:$0xff]  }
  0x1f   : > { %3496 = vmatpush3.bf16.msra.mxu0 %v4094_v7  ;;  %v232_v27 = vpack.c.bf16 %v4459_v25, %v224_v24  ;;  %v4485_v34 = vld [vmem:[%s4394_s15 + $0x20] sm:$0xff]  ;;  %v4488_v35 = vld [vmem:[%s4394_s15 + $0x30] sm:$0xff]  ;;  %v4129_v5 = vld [vmem:[%s5223_s1 + $0x138] sm:$0xff]  }
  0x20   : > { %3497 = vmatprep.subr.bf16.mxu0 %v4095_v8  ;;  %v4494_v37 = vld [vmem:[%s4394_s15 + $0x40] sm:$0xff]  ;;  %v4497_v38 = vld [vmem:[%s4394_s15 + $0x50] sm:$0xff]  ;;  %v4510_v42 = vpack.c.bf16 %v4488_v35, %v4485_v34  ;;  %v664_v7 = vpack.c.bf16 %v4485_v34, %v4459_v25  ;;  %v4123_v25 = vld [vmem:[%s5223_s1 + $0x108] sm:$0xff]  }
  0x21   : > { %v4500_v39 = vld [vmem:[%s4394_s15 + $0x12] sm:$0xff]  ;;  %v4503_v40 = vld [vmem:[%s4394_s15 + $0x22] sm:$0xff]  ;;  %v4517_v44 = vpack.c.bf16 %v4497_v38, %v4494_v37 }
  0x22   : > { %v4506_v41 = vld [vmem:[%s4394_s15 + $0x32] sm:$0xff]  ;;  %v4520_v45 = vld [vmem:[%s4394_s15 + $0x42] sm:$0xff]  ;;  %v962_v46 = vpack.c.bf16 %v4503_v40, %v4500_v39 }
  0x23   : > { %3498 = vmatpush3.bf16.msra.mxu0 %v4095_v8  ;;  %v963_v47 = vpack.c.bf16 %v4520_v45, %v4506_v41  ;;  %v4527_v48 = vld [vmem:[%s4394_s15 + $0x60] sm:$0xff]  ;;  %v4530_v49 = vld [vmem:[%s4394_s15 + $0x70] sm:$0xff]  ;;  %v4572_v63 = vpack.c.bf16 %v4506_v41, %v4503_v40  ;;  %v4133_v13 = vld [vmem:[%s5223_s1 + $0x158] sm:$0xff]  }
  0x24   : > { %3499 = vmatprep.subr.bf16.mxu0 %v4096_v9  ;;  %v506_v51 = vld [vmem:[%s4394_s15 + $0x2] sm:$0xff]  ;;  %v4540_v52 = vpack.c.bf16 %v4530_v49, %v4527_v48  ;;  %v4557_v58 = vld [vmem:[%s4394_s15 + $0x52] sm:$0xff]  ;;  %v666_v24 = vpack.c.bf16 %v4527_v48, %v4497_v38 }
  0x25   : > { %v514_v54 = vpack.c.bf16 %v4500_v39, %v506_v51  ;;  %v4560_v59 = vld [vmem:[%s4394_s15 + $0x62] sm:$0xff]  ;;  %v4579_v1 = vpack.c.bf16 %v4557_v58, %v4520_v45  ;;  %v4587_v3 = vld [vmem:[%s4394_s15 + $0x72] sm:$0xff] }
  0x26   : > { %v964_v60 = vpack.c.bf16 %v4560_v59, %v4557_v58  ;;  %v4591_v4 = vpack.c.bf16 %v4587_v3, %v4560_v59  ;;  %v4118_v8 = vld [vmem:[%s5223_s1 + $0xe0] sm:$0xff]   ;;  %v4128_v34 = vld [vmem:[%s5223_s1 + $0x130] sm:$0xff]   ;;  %v4163_v15 = vld [vmem:[%s5225_s3 + $0x48] sm:$0xff]  }
  0x27   : > { %3500 = vmatpush3.bf16.msra.mxu0 %v4096_v9  ;;  %v4119_v9 = vld [vmem:[%s5223_s1 + $0xe8] sm:$0xff]   ;;  %v4130_v12 = vld [vmem:[%s5223_s1 + $0x140] sm:$0xff]   ;;  %v4164_v22 = vld [vmem:[%s5225_s3 + $0x50] sm:$0xff]  }
  0x28   : > { %3501 = vmatprep.subr.bf16.mxu0 %v4097_v10  ;;  %v4162_v14 = vld [vmem:[%s5225_s3 + $0x40] sm:$0xff]   ;;  %v4136_v38 = vld [vmem:[%s5223_s1 + $0x170] sm:$0xff]   ;;  %v4137_v39 = vld [vmem:[%s5223_s1 + $0x178] sm:$0xff]  }
  0x29   : > { %3703 = vmatprep.subr.bf16.mxu1 %v4162_v14  ;;  %v4138_v40 = vld [vmem:[%s5223_s1 + $0x180] sm:$0xff]   ;;  %v4140_v48 = vld [vmem:[%s5223_s1 + $0x190] sm:$0xff]   ;;  %v4141_v41 = vld [vmem:[%s5223_s1 + $0x198] sm:$0xff]  }
  0x2a   : > { %3704 = vmatpush3.bf16.msra.mxu1 %v4162_v14  ;;  %v4142_v45 = vld [vmem:[%s5223_s1 + $0x1a0] sm:$0xff]   ;;  %v4152_v58 = vld [vmem:[%s5223_s1 + $0x1f0] sm:$0xff]  }
  0x2b   : > { %3502 = vmatpush3.bf16.msra.mxu0 %v4097_v10  ;;  %v4120_v10 = vld [vmem:[%s5223_s1 + $0xf0] sm:$0xff]   ;;  %3705 = vmatprep.subr.bf16.mxu1 %v4163_v15  ;;  %v4146_v51 = vld [vmem:[%s5223_s1 + $0x1c0] sm:$0xff]  }
  0x2c   : > { %3511 = vmatprep.subr.bf16.mxu0 %v4098_v11  ;;  %v4154_v59 = vld [vmem:[%s5223_s1 + $0x200] sm:$0xff]  }
  0x2e   : > { %3504 = vmatmul.mubr.bf16.vlgmr.msra.gmra.mrb[0].mxu0 %v4433_v16  ;;  %3706 = vmatpush3.bf16.msra.mxu1 %v4163_v15 }
  0x2f   : > { %3512 = vmatpush3.bf16.msra.mxu0 %v4098_v11  ;;  %3507 = vmatprep.mubr.bf16.mxu0 %v4437_v17  ;;  %v4121_v11 = vld [vmem:[%s5223_s1 + $0xf8] sm:$0xff]  }
  0x30   : > { %3513 = vmatprep.subr.bf16.mxu0 %v4099_v19  ;;  %3707 = vmatprep.subr.bf16.mxu1 %v4164_v22 }
  0x32   : > { %3708 = vmatpush3.bf16.msra.mxu1 %v4164_v22 }
  0x33   : > { %3514 = vmatpush3.bf16.msra.mxu0 %v4099_v19  ;;  %v4122_v19 = vld [vmem:[%s5223_s1 + $0x100] sm:$0xff]  }
  0x34   : > { %3515 = vmatprep.subr.bf16.mxu0 %v4100_v21 }
  0x36   : > { %3508 = vmatmul.mubr.bf16.gmra.mrb[4].mxu0 %v4463_v26 }
  0x37   : > { %3516 = vmatpush3.bf16.msra.mxu0 %v4100_v21  ;;  %3527 = vmatprep.mubr.bf16.mxu0 %v232_v27  ;;  %v665_v21 = vpack.c.bf16 %v4494_v37, %v4488_v35  ;;  %v4622_v27 = vld [vmem:[%s4394_s15 + $0x80] sm:$0xff] }
  0x38   : > { %3517 = vmatprep.subr.bf16.mxu0 %v4101_v28  ;;  %v4660_v35 = vld [vmem:[%s4394_s15 + $0x81] sm:$0xff] }
  0x39   : > { %v816_v37 = vpack.c.bf16 %v4660_v35, %v4455_v23  ;;  %v4135_v23 = vld [vmem:[%s5223_s1 + $0x168] sm:$0xff]  }
  0x3b   : > { %3518 = vmatpush3.bf16.msra.mxu0 %v4101_v28  ;;  %v4124_v28 = vld [vmem:[%s5223_s1 + $0x110] sm:$0xff]  }
  0x3c   : > { %3519 = vmatprep.subr.bf16.mxu0 %v4102_v29 }
  0x3f   : > { %3520 = vmatpush3.bf16.msra.mxu0 %v4102_v29  ;;  %v667_v29 = vpack.c.bf16 %v4622_v27, %v4530_v49 }
  0x40   : > { %3521 = vmatprep.subr.bf16.mxu0 %v4103_v30 }
  0x43   : > { %3522 = vmatpush3.bf16.msra.mxu0 %v4103_v30  ;;  %v4125_v30 = vld [vmem:[%s5223_s1 + $0x118] sm:$0xff]  }
  0x44   : > { %3523 = vmatprep.subr.bf16.mxu0 %v4104_v31 }
  0x47   : > { %3524 = vmatpush3.bf16.msra.mxu0 %v4104_v31  ;;  %v4126_v31 = vld [vmem:[%s5223_s1 + $0x120] sm:$0xff]  }
  0x48   : > { %3525 = vmatprep.subr.bf16.mxu0 %v4105_v33 }
  0x4b   : > { %3526 = vmatpush3.bf16.msra.mxu0 %v4105_v33  ;;  %v4127_v33 = vld [vmem:[%s5223_s1 + $0x128] sm:$0xff]  }
  0x4c   : > { %3535 = vmatprep.subr.bf16.mxu0 %v4106_v36 }
  0x4e   : > { %3528 = vmatmul.mubr.bf16.vlgmr.msra.gmra.mrb[0].mxu0 %v4510_v42 }
  0x4f   : > { %3536 = vmatpush3.bf16.msra.mxu0 %v4106_v36  ;;  %3531 = vmatprep.mubr.bf16.mxu0 %v4517_v44  ;;  %v4132_v36 = vld [vmem:[%s5223_s1 + $0x150] sm:$0xff]  }
  0x50   : > { %3537 = vmatprep.subr.bf16.mxu0 %v4107_v43 }
  0x53   : > { %3538 = vmatpush3.bf16.msra.mxu0 %v4107_v43  ;;  %v4139_v43 = vld [vmem:[%s5223_s1 + $0x188] sm:$0xff]  }
  0x54   : > { %3539 = vmatprep.subr.bf16.mxu0 %v4108_v50 }
  0x56   : > { %3532 = vmatmul.mubr.bf16.gmra.mrb[4].mxu0 %v4540_v52 }
  0x57   : > { %3540 = vmatpush3.bf16.msra.mxu0 %v4108_v50  ;;  %3551 = vmatprep.mubr.bf16.mxu0 %v514_v54  ;;  %v4144_v50 = vld [vmem:[%s5223_s1 + $0x1b0] sm:$0xff]  }
  0x58   : > { %3541 = vmatprep.subr.bf16.mxu0 %v4109_v53  ;;  %v3148_v54 = vld [vmem:[%s4394_s15 + $0x90] sm:$0xff] }
  0x5b   : > { %3542 = vmatpush3.bf16.msra.mxu0 %v4109_v53  ;;  %v4147_v53 = vld [vmem:[%s5223_s1 + $0x1c8] sm:$0xff]  }
  0x5c   : > { %3543 = vmatprep.subr.bf16.mxu0 %v4110_v55 }
  0x5f   : > { %3544 = vmatpush3.bf16.msra.mxu0 %v4110_v55  ;;  %v4148_v55 = vld [vmem:[%s5223_s1 + $0x1d0] sm:$0xff]  }
  0x60   : > { %3545 = vmatprep.subr.bf16.mxu0 %v4111_v56 }
  0x63   : > { %3546 = vmatpush3.bf16.msra.mxu0 %v4111_v56  ;;  %v1115_v56 = vpack.c.bf16 %v3148_v54, %v4622_v27  ;;  %v4172_v54 = vld [vmem:[%s5225_s3 + $0x10] sm:$0xff]  }
  0x64   : > { %3547 = vmatprep.subr.bf16.mxu0 %v4112_v57 }
  0x67   : > { %3548 = vmatpush3.bf16.msra.mxu0 %v4112_v57  ;;  %v4149_v57 = vld [vmem:[%s5223_s1 + $0x1d8] sm:$0xff]  }
  0x68   : > { %3549 = vmatprep.subr.bf16.mxu0 %v4113_v61 }
  0x6b   : > { %3550 = vmatpush3.bf16.msra.mxu0 %v4113_v61  ;;  %v3164_v61 = vld [vmem:[%s4394_s15 + $0x91] sm:$0xff] }
  0x6c   : > { %3559 = vmatprep.subr.bf16.mxu0 %v4114_v62 }
  0x6e   : > { %3552 = vmatmul.mubr.bf16.vlgmr.msra.gmra.mrb[0].mxu0 %v4572_v63 }
  0x6f   : > { %3560 = vmatpush3.bf16.msra.mxu0 %v4114_v62  ;;  %3555 = vmatprep.mubr.bf16.mxu0 %v4579_v1  ;;  %v4156_v62 = vld [vmem:[%s5223_s1 + $0x210] sm:$0xff]  }
  0x70   : > { %3561 = vmatprep.subr.bf16.mxu0 %v4115_v0 }
  0x73   : > { %3562 = vmatpush3.bf16.msra.mxu0 %v4115_v0  ;;  %v1264_v0 = vpack.c.bf16 %v3164_v61, %v4660_v35 }
  0x74   : > { %3563 = vmatprep.subr.bf16.mxu0 %v4116_v2 }
  0x76   : > { %3556 = vmatmul.mubr.bf16.gmra.mrb[4].mxu0 %v4591_v4 }
  0x77   : > { %3564 = vmatpush3.bf16.msra.mxu0 %v4116_v2  ;;  %3575 = vmatprep.mubr.bf16.mxu0 %v664_v7  ;;  %v4157_v2 = vld [vmem:[%s5223_s1 + $0x218] sm:$0xff]  }
  0x78   : > { %3565 = vmatprep.subr.bf16.mxu0 %v4117_v6 }
  0x7b   : > { %3566 = vmatpush3.bf16.msra.mxu0 %v4117_v6  ;;  %v3180_v6 = vld [vmem:[%s4394_s15 + $0x92] sm:$0xff] }
  0x7c   : > { %3567 = vmatprep.subr.bf16.mxu0 %v4118_v8 }
  0x7f   : > { %3568 = vmatpush3.bf16.msra.mxu0 %v4118_v8  ;;  %v4166_v8 = vld [vmem:[%s5225_s3 + $0x60] sm:$0xff]  }
  0x80   : > { %3569 = vmatprep.subr.bf16.mxu0 %v4119_v9 }
  0x83   : > { %3570 = vmatpush3.bf16.msra.mxu0 %v4119_v9  ;;  %v4167_v9 = vld [vmem:[%s5225_s3 + $0x68] sm:$0xff]  }
  0x84   : > { %3571 = vmatprep.subr.bf16.mxu0 %v4120_v10 }
  0x87   : > { %3572 = vmatpush3.bf16.msra.mxu0 %v4120_v10  ;;  %v4298_v10 = vmov 0.0  }
  0x88   : > { %3573 = vmatprep.subr.bf16.mxu0 %v4121_v11  ;;  %1585 = vst [vmem:[#allocation2] sm:$0xff] %v4298_v10  ;;  %1586 = vst [vmem:[#allocation2 + $0x8] sm:$0x3] %v4298_v10 }
  0x89   : > { %1588 = vst [vmem:[#allocation2 + $0x90] sm:$0xff] %v4298_v10  ;;  %1589 = vst [vmem:[#allocation2 + $0x98] sm:$0x3] %v4298_v10 }
  0x8a   : > { %1591 = vst [vmem:[#allocation2 + $0x10] sm:$0x1] %v4298_v10  ;;  %1592 = vst [vmem:[#allocation2 + $0x20] sm:$0x1] %v4298_v10 }
  0x8b   : > { %3574 = vmatpush3.bf16.msra.mxu0 %v4121_v11  ;;  %1593 = vst [vmem:[#allocation2 + $0x30] sm:$0x1] %v4298_v10  ;;  %1594 = vst [vmem:[#allocation2 + $0x40] sm:$0x1] %v4298_v10  ;;  %v4170_v11 = vld [vmem:[%s5225_s3] sm:$0xff]  }
  0x8c   : > { %3583 = vmatprep.subr.bf16.mxu0 %v4122_v19  ;;  %1595 = vst [vmem:[#allocation2 + $0x50] sm:$0x1] %v4298_v10  ;;  %1596 = vst [vmem:[#allocation2 + $0x60] sm:$0x1] %v4298_v10 }
  0x8d   : > { %1597 = vst [vmem:[#allocation2 + $0x70] sm:$0x1] %v4298_v10  ;;  %1598 = vst [vmem:[#allocation2 + $0x80] sm:$0x1] %v4298_v10 }
  0x8e   : > { %3576 = vmatmul.mubr.bf16.vlgmr.msra.gmra.mrb[0].mxu0 %v665_v21  ;;  %1601 = vst [vmem:[#allocation2 + $0x19] sm:$0x1] %v4298_v10  ;;  %1602 = vst [vmem:[#allocation2 + $0x29] sm:$0x1] %v4298_v10 }
  0x8f   : > { %3584 = vmatpush3.bf16.msra.mxu0 %v4122_v19  ;;  %3579 = vmatprep.mubr.bf16.mxu0 %v666_v24  ;;  %1603 = vst [vmem:[#allocation2 + $0x39] sm:$0x1] %v4298_v10  ;;  %1604 = vst [vmem:[#allocation2 + $0x49] sm:$0x1] %v4298_v10  ;;  %v3189_v19 = vld [vmem:[%s5224_s2] ss:$0 sm:$0xff] }
  0x90   : > { %3585 = vmatprep.subr.bf16.mxu0 %v4123_v25  ;;  %1605 = vst [vmem:[#allocation2 + $0x59] sm:$0x1] %v4298_v10  ;;  %1606 = vst [vmem:[#allocation2 + $0x69] sm:$0x1] %v4298_v10  ;;  %v3190_v24 = vld [vmem:[%s5224_s2 + $0x1] ss:$0 sm:$0xff] }
  0x91   : > { %1607 = vst [vmem:[#allocation2 + $0x79] sm:$0x1] %v4298_v10  ;;  %1608 = vst [vmem:[#allocation2 + $0x89] sm:$0x1] %v4298_v10  ;;  %v1647_v35 = vld [vmem:[#allocation2 + $0x1] sm:$0xff] }
  0x92   : > { %1600 = vst [vmem:[#allocation2 + $0x9] sm:$0x1] %v4298_v10  ;;  %1590 = vst [vmem:[#allocation2] sm:$0x1] %v4298_v10 }
  0x93   : > { %3586 = vmatpush3.bf16.msra.mxu0 %v4123_v25  ;;  %1599 = vst [vmem:[#allocation2 + $0x90] sm:$0x1] %v4298_v10  ;;  %1609 = vst [vmem:[#allocation2 + $0x99] sm:$0x1] %v4298_v10  ;;  %v4176_v10 = vld [vmem:[%s5225_s3 + $0x30] sm:$0xff]  }
  0x94   : > { %3587 = vmatprep.subr.bf16.mxu0 %v4124_v28 }
  0x96   : > { %3580 = vmatmul.mubr.bf16.gmra.mrb[4].mxu0 %v667_v29 }
  0x97   : > { %3588 = vmatpush3.bf16.msra.mxu0 %v4124_v28  ;;  %3599 = vmatprep.mubr.bf16.mxu0 %v813_v18  ;;  %v4131_v18 = vld [vmem:[%s5223_s1 + $0x148] sm:$0xff]  }
  0x98   : > { %3589 = vmatprep.subr.bf16.mxu0 %v4125_v30 }
  0x9b   : > { %3590 = vmatpush3.bf16.msra.mxu0 %v4125_v30 }
  0x9c   : > { %3591 = vmatprep.subr.bf16.mxu0 %v4126_v31 }
  0x9f   : > { %3592 = vmatpush3.bf16.msra.mxu0 %v4126_v31 }
  0xa0   : > { %3593 = vmatprep.subr.bf16.mxu0 %v4127_v33 }
  0xa3   : > { %3594 = vmatpush3.bf16.msra.mxu0 %v4127_v33 }
  0xa4   : > { %3595 = vmatprep.subr.bf16.mxu0 %v4128_v34 }
  0xa7   : > { %3596 = vmatpush3.bf16.msra.mxu0 %v4128_v34 }
  0xa8   : > { %3597 = vmatprep.subr.bf16.mxu0 %v4129_v5 }
  0xab   : > { %3598 = vmatpush3.bf16.msra.mxu0 %v4129_v5 }
  0xac   : > { %3607 = vmatprep.subr.bf16.mxu0 %v4130_v12 }
  0xae   : > { %3600 = vmatmul.mubr.bf16.vlgmr.msra.gmra.mrb[0].mxu0 %v814_v20  ;;  %v4134_v20 = vld [vmem:[%s5223_s1 + $0x160] sm:$0xff]  }
  0xaf   : > { %3608 = vmatpush3.bf16.msra.mxu0 %v4130_v12  ;;  %3603 = vmatprep.mubr.bf16.mxu0 %v815_v32  ;;  %v4165_v32 = vld [vmem:[%s5225_s3 + $0x58] sm:$0xff]  }
  0xb0   : > { %3609 = vmatprep.subr.bf16.mxu0 %v4131_v18  ;;  %3709 = vmatprep.subr.bf16.mxu1 %v4165_v32 }
  0xb1   : > { %3710 = vmatpush3.bf16.msra.mxu1 %v4165_v32 }
  0xb2   : > { %3711 = vmatprep.subr.bf16.mxu1 %v4166_v8 }
  0xb3   : > { %3610 = vmatpush3.bf16.msra.mxu0 %v4131_v18 }
  0xb4   : > { %3611 = vmatprep.subr.bf16.mxu0 %v4132_v36 }
  0xb5   : > { %3712 = vmatpush3.bf16.msra.mxu1 %v4166_v8  ;;  %v4175_v8 = vld [vmem:[%s5225_s3 + $0x28] sm:$0xff]  }
  0xb6   : > { %3604 = vmatmul.mubr.bf16.gmra.mrb[4].mxu0 %v816_v37  ;;  %3713 = vmatprep.subr.bf16.mxu1 %v4167_v9 }
  0xb7   : > { %3612 = vmatpush3.bf16.msra.mxu0 %v4132_v36  ;;  %3623 = vmatprep.mubr.bf16.mxu0 %v962_v46  ;;  %v4710_v46 = vld [vmem:[%s4394_s15 + $0x82] sm:$0xff]  ;;  %s3001_s15 = sshll.u32 %s217_s13, 4  ;;  %s5177_s15 = int_to_ptr.vmem [resolvable:$true] %s3001_s15 }
  0xb8   : > { %3613 = vmatprep.subr.bf16.mxu0 %v4133_v13  ;;  %v965_v49 = vpack.c.bf16 %v4710_v46, %v4587_v3  ;;  %v4160_v3 = vld [vmem:[%s5223_s1 + $0x230] sm:$0xff]   ;;  %v1413_v7 = vpack.c.bf16 %v3180_v6, %v4710_v46  ;;  %s4234_s25 = scalar_lea.vmem %s5177_s15, 1024  ;;  %p4241_p0 = scmp.lt.s32.totalorder %s5177_s15, %s4239_s30 }
  0xb9   : > { %3714 = vmatpush3.bf16.msra.mxu1 %v4167_v9  ;;  %p4235_p11 = scmp.ne.s32.totalorder %s5177_s15, %s4234_s25  ;;  %p4242_p1 = scmp.lt.s32.totalorder %s4240_s6, %s4234_s25 }
  0xbb   : > { %3614 = vmatpush3.bf16.msra.mxu0 %v4133_v13  ;;  %p4236_p12 = pnand %p4235_p11, %p4370_p5  ;;  %p4243_p2 = por %p4242_p1, %p4241_p0 }
  0xbc   : > { %3615 = vmatprep.subr.bf16.mxu0 %v4134_v20 }
  0xbd   : > { %p4237_p13 = pneg %p4236_p12 }
  0xbf   : > { %3616 = vmatpush3.bf16.msra.mxu0 %v4134_v20  ;;  %p4244_p3 = pnand %p4243_p2, %p4237_p13 }
  0xc0   : > { %3617 = vmatprep.subr.bf16.mxu0 %v4135_v23 }
  0xc3   : > { %3618 = vmatpush3.bf16.msra.mxu0 %v4135_v23 }
  0xc4   : > { %3619 = vmatprep.subr.bf16.mxu0 %v4136_v38 }
  0xc7   : > { %3620 = vmatpush3.bf16.msra.mxu0 %v4136_v38 }
  0xc8   : > { %3621 = vmatprep.subr.bf16.mxu0 %v4137_v39 }
  0xcb   : > { %3622 = vmatpush3.bf16.msra.mxu0 %v4137_v39 }
  0xcc   : > { %3631 = vmatprep.subr.bf16.mxu0 %v4138_v40 }
  0xce   : > { %3624 = vmatmul.mubr.bf16.vlgmr.msra.gmra.mrb[0].mxu0 %v963_v47  ;;  %v4143_v47 = vld [vmem:[%s5223_s1 + $0x1a8] sm:$0xff]  }
  0xcf   : > { %3632 = vmatpush3.bf16.msra.mxu0 %v4138_v40  ;;  %3627 = vmatprep.mubr.bf16.mxu0 %v964_v60  ;;  %v4155_v60 = vld [vmem:[%s5223_s1 + $0x208] sm:$0xff]  }
  0xd0   : > { %3633 = vmatprep.subr.bf16.mxu0 %v4139_v43 }
  0xd3   : > { %3634 = vmatpush3.bf16.msra.mxu0 %v4139_v43  ;;  %v4171_v43 = vld [vmem:[%s5225_s3 + $0x8] sm:$0xff]  }
  0xd4   : > { %3635 = vmatprep.subr.bf16.mxu0 %v4140_v48 }
  0xd6   : > { %3628 = vmatmul.mubr.bf16.gmra.mrb[4].mxu0 %v965_v49 }
  0xd7   : > { %3636 = vmatpush3.bf16.msra.mxu0 %v4140_v48  ;;  %3647 = vmatprep.mubr.bf16.mxu0 %v4510_v42  ;;  %v4145_v42 = vld [vmem:[%s5223_s1 + $0x1b8] sm:$0xff]  }
  0xd8   : > { %3637 = vmatprep.subr.bf16.mxu0 %v4141_v41 }
  0xdb   : > { %3638 = vmatpush3.bf16.msra.mxu0 %v4141_v41 }
  0xdc   : > { %3639 = vmatprep.subr.bf16.mxu0 %v4142_v45 }
  0xdf   : > { %3640 = vmatpush3.bf16.msra.mxu0 %v4142_v45 }
  0xe0   : > { %3641 = vmatprep.subr.bf16.mxu0 %v4143_v47 }
  0xe3   : > { %3642 = vmatpush3.bf16.msra.mxu0 %v4143_v47 }
  0xe4   : > { %3643 = vmatprep.subr.bf16.mxu0 %v4144_v50 }
  0xe7   : > { %3644 = vmatpush3.bf16.msra.mxu0 %v4144_v50 }
  0xe8   : > { %3645 = vmatprep.subr.bf16.mxu0 %v4145_v42 }
  0xeb   : > { %3646 = vmatpush3.bf16.msra.mxu0 %v4145_v42 }
  0xec   : > { %3655 = vmatprep.subr.bf16.mxu0 %v4146_v51 }
  0xee   : > { %3648 = vmatmul.mubr.bf16.vlgmr.msra.gmra.mrb[0].mxu0 %v4517_v44  ;;  %v4150_v44 = vld [vmem:[%s5223_s1 + $0x1e0] sm:$0xff]  }
  0xef   : > { %3656 = vmatpush3.bf16.msra.mxu0 %v4146_v51  ;;  %3651 = vmatprep.mubr.bf16.mxu0 %v4540_v52  ;;  %v4151_v52 = vld [vmem:[%s5223_s1 + $0x1e8] sm:$0xff]  }
  0xf0   : > { %3657 = vmatprep.subr.bf16.mxu0 %v4147_v53 }
  0xf3   : > { %3658 = vmatpush3.bf16.msra.mxu0 %v4147_v53 }
  0xf4   : > { %3659 = vmatprep.subr.bf16.mxu0 %v4148_v55 }
  0xf6   : > { %3652 = vmatmul.mubr.bf16.gmra.mrb[4].mxu0 %v1115_v56  ;;  %v1619_v56 = vld [vmem:[#allocation2] sm:$0xff] }
  0xf7   : > { %3660 = vmatpush3.bf16.msra.mxu0 %v4148_v55  ;;  %3671 = vmatprep.mubr.bf16.mxu0 %v4433_v16  ;;  %v4153_v16 = vld [vmem:[%s5223_s1 + $0x1f8] sm:$0xff]  }
  0xf8   : > { %3661 = vmatprep.subr.bf16.mxu0 %v4149_v57 }
  0xfb   : > { %3662 = vmatpush3.bf16.msra.mxu0 %v4149_v57 }
  0xfc   : > { %3663 = vmatprep.subr.bf16.mxu0 %v4150_v44 }
  0xff   : > { %3664 = vmatpush3.bf16.msra.mxu0 %v4150_v44 }
 0x100   : > { %3665 = vmatprep.subr.bf16.mxu0 %v4151_v52 }
 0x103   : > { %3666 = vmatpush3.bf16.msra.mxu0 %v4151_v52 }
 0x104   : > { %3667 = vmatprep.subr.bf16.mxu0 %v4152_v58 }
 0x107   : > { %3668 = vmatpush3.bf16.msra.mxu0 %v4152_v58 }
 0x108   : > { %3669 = vmatprep.subr.bf16.mxu0 %v4153_v16 }
 0x10b   : > { %3670 = vmatpush3.bf16.msra.mxu0 %v4153_v16 }
 0x10c   : > { %3679 = vmatprep.subr.bf16.mxu0 %v4154_v59 }
 0x10e   : > { %3672 = vmatmul.mubr.bf16.vlgmr.msra.gmra.mrb[0].mxu0 %v4437_v17  ;;  %v4158_v17 = vld [vmem:[%s5223_s1 + $0x220] sm:$0xff]  }
 0x10f   : > { %3680 = vmatpush3.bf16.msra.mxu0 %v4154_v59  ;;  %3675 = vmatprep.mubr.bf16.mxu0 %v4463_v26  ;;  %v4159_v26 = vld [vmem:[%s5223_s1 + $0x228] sm:$0xff]  }
 0x110   : > { %3681 = vmatprep.subr.bf16.mxu0 %v4155_v60 }
 0x113   : > { %3682 = vmatpush3.bf16.msra.mxu0 %v4155_v60 }
 0x114   : > { %3683 = vmatprep.subr.bf16.mxu0 %v4156_v62 }
 0x116   : > { %3676 = vmatmul.mubr.bf16.gmra.mrb[4].mxu0 %v1264_v0  ;;  %v4173_v0 = vld [vmem:[%s5225_s3 + $0x18] sm:$0xff]  }
 0x117   : > { %3684 = vmatpush3.bf16.msra.mxu0 %v4156_v62  ;;  %3695 = vmatprep.mubr.bf16.mxu0 %v4572_v63  ;;  %v4161_v63 = vld [vmem:[%s5223_s1 + $0x238] sm:$0xff]  }
 0x118   : > { %3685 = vmatprep.subr.bf16.mxu0 %v4157_v2 }
 0x11b   : > { %3686 = vmatpush3.bf16.msra.mxu0 %v4157_v2 }
 0x11c   : > { %3687 = vmatprep.subr.bf16.mxu0 %v4158_v17 }
 0x11f   : > { %3688 = vmatpush3.bf16.msra.mxu0 %v4158_v17 }
 0x120   : > { %3689 = vmatprep.subr.bf16.mxu0 %v4159_v26 }
 0x123   : > { %3690 = vmatpush3.bf16.msra.mxu0 %v4159_v26 }
 0x124   : > { %3691 = vmatprep.subr.bf16.mxu0 %v4160_v3 }
 0x127   : > { %3692 = vmatpush3.bf16.msra.mxu0 %v4160_v3 }
 0x128   : > { %3693 = vmatprep.subr.bf16.mxu0 %v4161_v63 }
 0x12b   : > { %3694 = vmatpush3.bf16.msra.mxu0 %v4161_v63  ;;  %v4174_v63 = vld [vmem:[%s5225_s3 + $0x20] sm:$0xff]  }
 0x12e   : > { %3696 = vmatmul.mubr.bf16.vlgmr.msra.gmra.mrb[0].mxu0 %v4579_v1  ;;  %v4168_v1 = vld [vmem:[%s5225_s3 + $0x70] sm:$0xff]  }
 0x12f   : > { %3699 = vmatprep.mubr.bf16.mxu0 %v4591_v4  ;;  %3715 = vmatprep.subr.bf16.mxu1 %v4168_v1  ;;  %v4169_v4 = vld [vmem:[%s5225_s3 + $0x78] sm:$0xff]  }
 0x130   : > { %3716 = vmatpush3.bf16.msra.mxu1 %v4168_v1  ;;  %v4177_v1 = vld [vmem:[%s5225_s3 + $0x38] sm:$0xff]  }
 0x131   : > { %3717 = vmatprep.subr.bf16.mxu1 %v4169_v4 }
 0x134   : > { %3718 = vmatpush3.bf16.msra.mxu1 %v4169_v4  ;;  %v4178_v4 = vld [vmem:[%s5225_s3 + $0x80] sm:$0xff]  }
 0x135   : > { %3727 = vmatprep.subr.bf16.mxu1 %v4170_v11 }
 0x136   : > { %3700 = vmatmul.mubr.bf16.gmra.mrb[4].mxu0 %v1413_v7 }
 0x201   : > { %v3697_v21 = vpop.f32.mrb[0].mxu0 }
 0x202   : > { %v1558_v25 = vmul.f32 %v3697_v21, %v3189_v19  ;;  %v1512_v27 = vpop.f32.mrb[1].mxu0 }
 0x203   : > { %v1556_v28 = vmul.f32 %v3189_v19, %v1512_v27  ;;  %v3698_v29 = vpop.f32.mrb[2].mxu0  ;;  %v4179_v27 = vld [vmem:[%s5225_s3 + $0x88] sm:$0xff]  }
 0x204   : > { %v1571_v30 = vadd.f32 %v3190_v24, %v1558_v25  ;;  %v1559_v31 = vmul.f32 %v3698_v29, %v3189_v19  ;;  %v1515_v33 = vpop.f32.mrb[3].mxu0  ;;  %v4180_v29 = vld [vmem:[%s5225_s3 + $0x90] sm:$0xff]  }
 0x205   : > { %v1569_v34 = vadd.f32 %v3190_v24, %v1556_v28  ;;  %v1557_v5 = vmul.f32 %v3189_v19, %v1515_v33 }
 0x206   : > { %v4816_v12 = vmax.f32 %v1571_v30, 0.0  ;;  %v1572_v18 = vadd.f32 %v3190_v24, %v1559_v31  ;;  %v1901_v31 = vld [vmem:[#allocation2 + $0x2] sm:$0xff] }
 0x207   : > { %v4818_v36 = vmax.f32 %v1569_v34, 0.0  ;;  %v1570_v37 = vadd.f32 %v3190_v24, %v1557_v5  ;;  %v4181_v5 = vld [vmem:[%s5225_s3 + $0x98] sm:$0xff]  }
 0x208   : > { %1613 = vst [vmem:[#allocation2 + $0x31] sm:$0xff] %v4816_v12  ;;  %v4821_v13 = vmax.f32 %v1572_v18, 0.0 }
 0x209   : > { %1611 = vst [vmem:[#allocation2 + $0x11] sm:$0xff] %v4818_v36  ;;  %v4824_v14 = vmax.f32 %v1570_v37, 0.0  ;;  %v3701_v15 = vpop.f32.mrb[4].mxu0  ;;  %v1655_v20 = vpack.c.bf16 %v4818_v36, %v1647_v35  ;;  %v4182_v35 = vld [vmem:[%s5225_s3 + $0xa0] sm:$0xff]   ;;  %v4183_v37 = vld [vmem:[%s5225_s3 + $0xa8] sm:$0xff]  }
 0x20a   : > { %1614 = vst [vmem:[#allocation2 + $0x41] sm:$0xff] %v4821_v13  ;;  %v1562_v22 = vmul.f32 %v3701_v15, %v3189_v19  ;;  %v1528_v23 = vpop.f32.mrb[5].mxu0  ;;  %v2208_v32 = vpack.c.bf16 %v4821_v13, %v4816_v12  ;;  %v4184_v15 = vld [vmem:[%s5225_s3 + $0xb0] sm:$0xff]  }
 0x20b   : > { %1612 = vst [vmem:[#allocation2 + $0x21] sm:$0xff] %v4824_v14  ;;  %v1560_v38 = vmul.f32 %v3189_v19, %v1528_v23  ;;  %v3702_v39 = vpop.f32.mrb[6].mxu0  ;;  %3719 = vmatprep.mubr.bf16.mxu1 %v1655_v20  ;;  %v4833_v40 = vpack.c.bf16 %v4816_v12, %v4824_v14  ;;  %v2207_v46 = vpack.c.bf16 %v4824_v14, %v4818_v36  ;;  %v4185_v20 = vld [vmem:[%s5225_s3 + $0xb8] sm:$0xff]   ;;  %v4202_v14 = vld [vmem:[%s5225_s3 + $0x140] sm:$0xff]  }
 0x20c   : > { %v1575_v48 = vadd.f32 %v3190_v24, %v1562_v22  ;;  %v1563_v49 = vmul.f32 %v3702_v39, %v3189_v19  ;;  %v1531_v41 = vpop.f32.mrb[7].mxu0  ;;  %v4186_v22 = vld [vmem:[%s5225_s3 + $0xc0] sm:$0xff]   ;;  %v4201_v36 = vld [vmem:[%s5225_s3 + $0x138] sm:$0xff]  }
 0x20d   : > { %v1573_v45 = vadd.f32 %v3190_v24, %v1560_v38  ;;  %v1561_v47 = vmul.f32 %v3189_v19, %v1531_v41  ;;  %3720 = vmatmul.mubr.bf16.vlgmr.msra.gmra.mrb[0].mxu1 %v4833_v40  ;;  %v4187_v38 = vld [vmem:[%s5225_s3 + $0xc8] sm:$0xff]   ;;  %v4189_v41 = vld [vmem:[%s5225_s3 + $0xd8] sm:$0xff]   ;;  %v4206_v12 = vld [vmem:[%s5225_s3 + $0x160] sm:$0xff]  }
 0x20e   : > { %v4841_v50 = vmax.f32 %v1575_v48, 0.0  ;;  %v1576_v42 = vadd.f32 %v3190_v24, %v1563_v49  ;;  %3728 = vmatpush3.bf16.msra.mxu1 %v4170_v11 }
 0x20f   : > { %v4843_v51 = vmax.f32 %v1573_v45, 0.0  ;;  %v1574_v53 = vadd.f32 %v3190_v24, %v1561_v47  ;;  %3729 = vmatprep.subr.bf16.mxu1 %v4171_v43  ;;  %v4860_v58 = vld [vmem:[#allocation2 + $0x32] sm:$0xff]  ;;  %v4190_v47 = vld [vmem:[%s5225_s3 + $0xe0] sm:$0xff]  }
 0x210   : > { %1617 = vst [vmem:[#allocation2 + $0x71] sm:$0xff] %v4841_v50  ;;  %v4849_v55 = vmax.f32 %v1576_v42, 0.0  ;;  %v4858_v52 = vld [vmem:[#allocation2 + $0x10] sm:$0xff]  ;;  %v4191_v42 = vld [vmem:[%s5225_s3 + $0xe8] sm:$0xff]  }
 0x211   : > { %1615 = vst [vmem:[#allocation2 + $0x51] sm:$0xff] %v4843_v51  ;;  %v4852_v57 = vmax.f32 %v1574_v53, 0.0  ;;  %v4856_v44 = vpack.c.bf16 %v4843_v51, %v4821_v13  ;;  %v4862_v16 = vld [vmem:[#allocation2 + $0x42] sm:$0xff]  ;;  %v4880_v2 = vld [vmem:[#allocation2 + $0x12] sm:$0xff]  ;;  %v1627_v17 = vpack.c.bf16 %v4858_v52, %v1619_v56 }
 0x212   : > { %1618 = vst [vmem:[#allocation2 + $0x81] sm:$0xff] %v4849_v55  ;;  %3730 = vmatpush3.bf16.msra.mxu1 %v4171_v43  ;;  %v4865_v59 = vld [vmem:[#allocation2 + $0x22] sm:$0xff]  ;;  %v2210_v60 = vpack.c.bf16 %v4849_v55, %v4841_v50  ;;  %v2357_v61 = vpack.c.bf16 %v4862_v16, %v4860_v58  ;;  %v4911_v21 = vld [vmem:[#allocation2 + $0x30] sm:$0xff]  ;;  %v1909_v18 = vpack.c.bf16 %v4880_v2, %v1901_v31 }
 0x213   : > { %1616 = vst [vmem:[#allocation2 + $0x61] sm:$0xff] %v4852_v57  ;;  %3723 = vmatprep.mubr.bf16.mxu1 %v4856_v44  ;;  %3731 = vmatprep.subr.bf16.mxu1 %v4172_v54  ;;  %v4875_v62 = vpack.c.bf16 %v4841_v50, %v4852_v57  ;;  %v2209_v26 = vpack.c.bf16 %v4852_v57, %v4843_v51  ;;  %v1621_v11 = vld [vmem:[#allocation2 + $0x20] sm:$0xff]  ;;  %v4188_v43 = vld [vmem:[%s5225_s3 + $0xd0] sm:$0xff]   ;;  %v4207_v13 = vld [vmem:[%s5225_s3 + $0x168] sm:$0xff]  }
 0x214   : > { %v2356_v3 = vpack.c.bf16 %v4865_v59, %v4880_v2  ;;  %v4914_v24 = vpack.c.bf16 %v4911_v21, %v1621_v11  ;;  %v4916_v25 = vld [vmem:[#allocation2 + $0x40] sm:$0xff]  ;;  %v4960_v23 = vpack.c.bf16 %v4860_v58, %v4865_v59  ;;  %v2058_v45 = vpack.c.bf16 %v1621_v11, %v4858_v52  ;;  %v4192_v53 = vld [vmem:[%s5225_s3 + $0xf0] sm:$0xff]   ;;  %v4199_v11 = vld [vmem:[%s5225_s3 + $0x128] sm:$0xff]  }
 0x215   : > { %3724 = vmatmul.mubr.bf16.gmra.mrb[4].mxu1 %v4875_v62  ;;  %v4194_v56 = vld [vmem:[%s5225_s3 + $0x100] sm:$0xff]   ;;  %v2059_v52 = vpack.c.bf16 %v4916_v25, %v4911_v21  ;;  %v4204_v21 = vld [vmem:[%s5225_s3 + $0x150] sm:$0xff]   ;;  %v4209_v50 = vld [vmem:[%s5225_s3 + $0x178] sm:$0xff]  }
 0x216   : > { %3732 = vmatpush3.bf16.msra.mxu1 %v4172_v54  ;;  %3743 = vmatprep.mubr.bf16.mxu1 %v1627_v17  ;;  %v4193_v54 = vld [vmem:[%s5225_s3 + $0xf8] sm:$0xff]   ;;  %v4210_v51 = vld [vmem:[%s5225_s3 + $0x180] sm:$0xff]   ;;  %v4211_v57 = vld [vmem:[%s5225_s3 + $0x188] sm:$0xff]  }
 0x217   : > { %3733 = vmatprep.subr.bf16.mxu1 %v4173_v0  ;;  %v4932_v33 = vld [vmem:[#allocation2 + $0x70] sm:$0xff]  ;;  %v4213_v58 = vld [vmem:[%s5225_s3 + $0x198] sm:$0xff]  }
 0x218   : > { %v4891_v6 = vld [vmem:[#allocation2 + $0x52] sm:$0xff] }
 0x219   : > { %v4909_v19 = vld [vmem:[#allocation2 + $0x50] sm:$0xff]  ;;  %v4967_v39 = vpack.c.bf16 %v4891_v6, %v4862_v16  ;;  %v4214_v16 = vld [vmem:[%s5225_s3 + $0x1a0] sm:$0xff]  }
 0x21a   : > { %3734 = vmatpush3.bf16.msra.mxu1 %v4173_v0  ;;  %v4893_v7 = vld [vmem:[#allocation2 + $0x62] sm:$0xff]  ;;  %v4923_v28 = vpack.c.bf16 %v4909_v19, %v4916_v25  ;;  %v4974_v48 = vld [vmem:[#allocation2 + $0x72] sm:$0xff] }
 0x21b   : > { %3735 = vmatprep.subr.bf16.mxu1 %v4174_v63  ;;  %v2358_v9 = vpack.c.bf16 %v4893_v7, %v4891_v6  ;;  %v4930_v30 = vld [vmem:[#allocation2 + $0x60] sm:$0xff]  ;;  %v4978_v49 = vpack.c.bf16 %v4974_v48, %v4893_v7  ;;  %v4195_v0 = vld [vmem:[%s5225_s3 + $0x108] sm:$0xff]   ;;  %v4205_v25 = vld [vmem:[%s5225_s3 + $0x158] sm:$0xff]  }
 0x21c   : > { %v4936_v34 = vpack.c.bf16 %v4932_v33, %v4930_v30  ;;  %v2060_v17 = vpack.c.bf16 %v4930_v30, %v4909_v19  ;;  %v4200_v19 = vld [vmem:[%s5225_s3 + $0x130] sm:$0xff]   ;;  %v4218_v6 = vld [vmem:[%s5225_s3 + $0x1c0] sm:$0xff]   ;;  %v4219_v7 = vld [vmem:[%s5225_s3 + $0x1c8] sm:$0xff]  }
 0x21d   : > { %v4212_v59 = vld [vmem:[%s5225_s3 + $0x190] sm:$0xff]   ;;  %v4223_v30 = vld [vmem:[%s5225_s3 + $0x1e8] sm:$0xff]  }
 0x21e   : > { %3736 = vmatpush3.bf16.msra.mxu1 %v4174_v63  ;;  %v4196_v63 = vld [vmem:[%s5225_s3 + $0x110] sm:$0xff]  }
 0x21f   : > { %3737 = vmatprep.subr.bf16.mxu1 %v4175_v8  ;;  %v4224_v31 = vld [vmem:[%s5225_s3 + $0x1f0] sm:$0xff]  }
 0x222   : > { %3738 = vmatpush3.bf16.msra.mxu1 %v4175_v8  ;;  %v5010_v8 = vld [vmem:[#allocation2 + $0x80] sm:$0xff] }
 0x223   : > { %3739 = vmatprep.subr.bf16.mxu1 %v4176_v10 }
 0x226   : > { %3740 = vmatpush3.bf16.msra.mxu1 %v4176_v10  ;;  %v2061_v10 = vpack.c.bf16 %v5010_v8, %v4932_v33  ;;  %v4226_v33 = vld [vmem:[%s5225_s3 + $0x200] sm:$0xff]  }
 0x227   : > { %3741 = vmatprep.subr.bf16.mxu1 %v4177_v1 }
 0x22a   : > { %3742 = vmatpush3.bf16.msra.mxu1 %v4177_v1  ;;  %v4197_v1 = vld [vmem:[%s5225_s3 + $0x118] sm:$0xff]  }
 0x22b   : > { %3751 = vmatprep.subr.bf16.mxu1 %v4178_v4 }
 0x22d   : > { %3744 = vmatmul.mubr.bf16.vlgmr.msra.gmra.mrb[0].mxu1 %v4914_v24 }
 0x22e   : > { %3747 = vmatprep.mubr.bf16.mxu1 %v4923_v28  ;;  %3752 = vmatpush3.bf16.msra.mxu1 %v4178_v4  ;;  %v4198_v4 = vld [vmem:[%s5225_s3 + $0x120] sm:$0xff]  }
 0x22f   : > { %3753 = vmatprep.subr.bf16.mxu1 %v4179_v27 }
 0x232   : > { %3754 = vmatpush3.bf16.msra.mxu1 %v4179_v27 }
 0x233   : > { %3755 = vmatprep.subr.bf16.mxu1 %v4180_v29 }
 0x235   : > { %3748 = vmatmul.mubr.bf16.gmra.mrb[4].mxu1 %v4936_v34 }
 0x236   : > { %3756 = vmatpush3.bf16.msra.mxu1 %v4180_v29  ;;  %3767 = vmatprep.mubr.bf16.mxu1 %v1909_v18  ;;  %v4221_v29 = vld [vmem:[%s5225_s3 + $0x1d8] sm:$0xff]  }
 0x237   : > { %3757 = vmatprep.subr.bf16.mxu1 %v4181_v5  ;;  %v2654_v18 = vld [vmem:[#allocation2 + $0x91] sm:$0xff] }
 0x23a   : > { %3758 = vmatpush3.bf16.msra.mxu1 %v4181_v5  ;;  %v4228_v5 = vld [vmem:[%s5225_s3 + $0x210] sm:$0xff]  }
 0x23b   : > { %3759 = vmatprep.subr.bf16.mxu1 %v4182_v35 }
 0x23e   : > { %3760 = vmatpush3.bf16.msra.mxu1 %v4182_v35  ;;  %v2658_v35 = vpack.c.bf16 %v2654_v18, %v4849_v55  ;;  %v4231_v55 = vld [vmem:[%s5225_s3 + $0x228] sm:$0xff]  }
 0x23f   : > { %3761 = vmatprep.subr.bf16.mxu1 %v4183_v37 }
 0x242   : > { %3762 = vmatpush3.bf16.msra.mxu1 %v4183_v37  ;;  %v4229_v37 = vld [vmem:[%s5225_s3 + $0x218] sm:$0xff]  }
 0x243   : > { %3763 = vmatprep.subr.bf16.mxu1 %v4184_v15 }
 0x246   : > { %3764 = vmatpush3.bf16.msra.mxu1 %v4184_v15  ;;  %v4233_v15 = vld [vmem:[%s5225_s3 + $0x238] sm:$0xff]  }
 0x247   : > { %3765 = vmatprep.subr.bf16.mxu1 %v4185_v20 }
 0x24a   : > { %3766 = vmatpush3.bf16.msra.mxu1 %v4185_v20  ;;  %v2803_v20 = vld [vmem:[#allocation2 + $0x92] sm:$0xff] }
 0x24b   : > { %3775 = vmatprep.subr.bf16.mxu1 %v4186_v22 }
 0x24d   : > { %3768 = vmatmul.mubr.bf16.vlgmr.msra.gmra.mrb[0].mxu1 %v4960_v23 }
 0x24e   : > { %3771 = vmatprep.mubr.bf16.mxu1 %v4967_v39  ;;  %3776 = vmatpush3.bf16.msra.mxu1 %v4186_v22 }
 0x24f   : > { %3777 = vmatprep.subr.bf16.mxu1 %v4187_v38 }
 0x252   : > { %3778 = vmatpush3.bf16.msra.mxu1 %v4187_v38 }
 0x253   : > { %3779 = vmatprep.subr.bf16.mxu1 %v4188_v43 }
 0x255   : > { %3772 = vmatmul.mubr.bf16.gmra.mrb[4].mxu1 %v4978_v49 }
 0x256   : > { %3780 = vmatpush3.bf16.msra.mxu1 %v4188_v43  ;;  %3791 = vmatprep.mubr.bf16.mxu1 %v2058_v45  ;;  %v3264_v43 = vld [vmem:[%s5226_s4 + $0x1] ss:$0 sm:$0xff] }
 0x257   : > { %3781 = vmatprep.subr.bf16.mxu1 %v4189_v41 }
 0x25a   : > { %3782 = vmatpush3.bf16.msra.mxu1 %v4189_v41 }
 0x25b   : > { %3783 = vmatprep.subr.bf16.mxu1 %v4190_v47 }
 0x25e   : > { %3784 = vmatpush3.bf16.msra.mxu1 %v4190_v47 }
 0x25f   : > { %3785 = vmatprep.subr.bf16.mxu1 %v4191_v42 }
 0x262   : > { %3786 = vmatpush3.bf16.msra.mxu1 %v4191_v42 }
 0x263   : > { %3787 = vmatprep.subr.bf16.mxu1 %v4192_v53 }
 0x266   : > { %3788 = vmatpush3.bf16.msra.mxu1 %v4192_v53 }
 0x267   : > { %3789 = vmatprep.subr.bf16.mxu1 %v4193_v54 }
 0x26a   : > { %3790 = vmatpush3.bf16.msra.mxu1 %v4193_v54 }
 0x26b   : > { %3799 = vmatprep.subr.bf16.mxu1 %v4194_v56 }
 0x26d   : > { %3792 = vmatmul.mubr.bf16.vlgmr.msra.gmra.mrb[0].mxu1 %v2059_v52 }
 0x26e   : > { %3795 = vmatprep.mubr.bf16.mxu1 %v2060_v17  ;;  %3800 = vmatpush3.bf16.msra.mxu1 %v4194_v56 }
 0x26f   : > { %3801 = vmatprep.subr.bf16.mxu1 %v4195_v0 }
 0x272   : > { %3802 = vmatpush3.bf16.msra.mxu1 %v4195_v0 }
 0x273   : > { %3803 = vmatprep.subr.bf16.mxu1 %v4196_v63 }
 0x275   : > { %3796 = vmatmul.mubr.bf16.gmra.mrb[4].mxu1 %v2061_v10 }
 0x276   : > { %3804 = vmatpush3.bf16.msra.mxu1 %v4196_v63  ;;  %3815 = vmatprep.mubr.bf16.mxu1 %v2207_v46  ;;  %v4203_v46 = vld [vmem:[%s5225_s3 + $0x148] sm:$0xff]  }
 0x277   : > { %3805 = vmatprep.subr.bf16.mxu1 %v4197_v1 }
 0x27a   : > { %3806 = vmatpush3.bf16.msra.mxu1 %v4197_v1 }
 0x27b   : > { %3807 = vmatprep.subr.bf16.mxu1 %v4198_v4 }
 0x27e   : > { %3808 = vmatpush3.bf16.msra.mxu1 %v4198_v4 }
 0x27f   : > { %3809 = vmatprep.subr.bf16.mxu1 %v4199_v11 }
 0x282   : > { %3810 = vmatpush3.bf16.msra.mxu1 %v4199_v11 }
 0x283   : > { %3811 = vmatprep.subr.bf16.mxu1 %v4200_v19 }
 0x286   : > { %3812 = vmatpush3.bf16.msra.mxu1 %v4200_v19 }
 0x287   : > { %3813 = vmatprep.subr.bf16.mxu1 %v4201_v36 }
 0x28a   : > { %3814 = vmatpush3.bf16.msra.mxu1 %v4201_v36 }
 0x28b   : > { %3823 = vmatprep.subr.bf16.mxu1 %v4202_v14 }
 0x28d   : > { %3816 = vmatmul.mubr.bf16.vlgmr.msra.gmra.mrb[0].mxu1 %v2208_v32  ;;  %v4208_v32 = vld [vmem:[%s5225_s3 + $0x170] sm:$0xff]  }
 0x28e   : > { %3819 = vmatprep.mubr.bf16.mxu1 %v2209_v26  ;;  %3824 = vmatpush3.bf16.msra.mxu1 %v4202_v14  ;;  %v4216_v26 = vld [vmem:[%s5225_s3 + $0x1b0] sm:$0xff]  }
 0x28f   : > { %3825 = vmatprep.subr.bf16.mxu1 %v4203_v46 }
 0x292   : > { %3826 = vmatpush3.bf16.msra.mxu1 %v4203_v46 }
 0x293   : > { %3827 = vmatprep.subr.bf16.mxu1 %v4204_v21 }
 0x295   : > { %3820 = vmatmul.mubr.bf16.gmra.mrb[4].mxu1 %v2210_v60  ;;  %v5083_v60 = vld [vmem:[#allocation2 + $0x82] sm:$0xff] }
 0x296   : > { %3828 = vmatpush3.bf16.msra.mxu1 %v4204_v21  ;;  %3839 = vmatprep.mubr.bf16.mxu1 %v2356_v3  ;;  %v2359_v2 = vpack.c.bf16 %v5083_v60, %v4974_v48  ;;  %v4217_v3 = vld [vmem:[%s5225_s3 + $0x1b8] sm:$0xff]   ;;  %v2807_v22 = vpack.c.bf16 %v2803_v20, %v5083_v60 }
 0x297   : > { %3829 = vmatprep.subr.bf16.mxu1 %v4205_v25 }
 0x29a   : > { %3830 = vmatpush3.bf16.msra.mxu1 %v4205_v25 }
 0x29b   : > { %3831 = vmatprep.subr.bf16.mxu1 %v4206_v12 }
 0x29e   : > { %3832 = vmatpush3.bf16.msra.mxu1 %v4206_v12 }
 0x29f   : > { %3833 = vmatprep.subr.bf16.mxu1 %v4207_v13 }
 0x2a2   : > { %3834 = vmatpush3.bf16.msra.mxu1 %v4207_v13 }
 0x2a3   : > { %3835 = vmatprep.subr.bf16.mxu1 %v4208_v32 }
 0x2a6   : > { %3836 = vmatpush3.bf16.msra.mxu1 %v4208_v32 }
 0x2a7   : > { %3837 = vmatprep.subr.bf16.mxu1 %v4209_v50 }
 0x2aa   : > { %3838 = vmatpush3.bf16.msra.mxu1 %v4209_v50 }
 0x2ab   : > { %3847 = vmatprep.subr.bf16.mxu1 %v4210_v51 }
 0x2ad   : > { %3840 = vmatmul.mubr.bf16.vlgmr.msra.gmra.mrb[0].mxu1 %v2357_v61  ;;  %v4215_v61 = vld [vmem:[%s5225_s3 + $0x1a8] sm:$0xff]  }
 0x2ae   : > { %3843 = vmatprep.mubr.bf16.mxu1 %v2358_v9  ;;  %3848 = vmatpush3.bf16.msra.mxu1 %v4210_v51  ;;  %v4220_v9 = vld [vmem:[%s5225_s3 + $0x1d0] sm:$0xff]  }
 0x2af   : > { %3849 = vmatprep.subr.bf16.mxu1 %v4211_v57 }
 0x2b2   : > { %3850 = vmatpush3.bf16.msra.mxu1 %v4211_v57 }
 0x2b3   : > { %3851 = vmatprep.subr.bf16.mxu1 %v4212_v59 }
 0x2b5   : > { %3844 = vmatmul.mubr.bf16.gmra.mrb[4].mxu1 %v2359_v2 }
 0x2b6   : > { %3852 = vmatpush3.bf16.msra.mxu1 %v4212_v59  ;;  %3863 = vmatprep.mubr.bf16.mxu1 %v4914_v24  ;;  %v2505_v24 = vld [vmem:[#allocation2 + $0x90] sm:$0xff] }
 0x2b7   : > { %3853 = vmatprep.subr.bf16.mxu1 %v4213_v58  ;;  %v2509_v27 = vpack.c.bf16 %v2505_v24, %v5010_v8 }
 0x2ba   : > { %3854 = vmatpush3.bf16.msra.mxu1 %v4213_v58 }
 0x2bb   : > { %3855 = vmatprep.subr.bf16.mxu1 %v4214_v16 }
 0x2be   : > { %3856 = vmatpush3.bf16.msra.mxu1 %v4214_v16 }
 0x2bf   : > { %3857 = vmatprep.subr.bf16.mxu1 %v4215_v61 }
 0x2c2   : > { %3858 = vmatpush3.bf16.msra.mxu1 %v4215_v61 }
 0x2c3   : > { %3859 = vmatprep.subr.bf16.mxu1 %v4216_v26 }
 0x2c6   : > { %3860 = vmatpush3.bf16.msra.mxu1 %v4216_v26 }
 0x2c7   : > { %3861 = vmatprep.subr.bf16.mxu1 %v4217_v3 }
 0x2ca   : > { %3862 = vmatpush3.bf16.msra.mxu1 %v4217_v3 }
 0x2cb   : > { %3871 = vmatprep.subr.bf16.mxu1 %v4218_v6 }
 0x2cd   : > { %3864 = vmatmul.mubr.bf16.vlgmr.msra.gmra.mrb[0].mxu1 %v4923_v28  ;;  %v4222_v28 = vld [vmem:[%s5225_s3 + $0x1e0] sm:$0xff]  }
 0x2ce   : > { %3867 = vmatprep.mubr.bf16.mxu1 %v4936_v34  ;;  %3872 = vmatpush3.bf16.msra.mxu1 %v4218_v6  ;;  %v4227_v34 = vld [vmem:[%s5225_s3 + $0x208] sm:$0xff]  }
 0x2cf   : > { %3873 = vmatprep.subr.bf16.mxu1 %v4219_v7 }
 0x2d2   : > { %3874 = vmatpush3.bf16.msra.mxu1 %v4219_v7 }
 0x2d3   : > { %3875 = vmatprep.subr.bf16.mxu1 %v4220_v9 }
 0x2d5   : > { %3868 = vmatmul.mubr.bf16.gmra.mrb[4].mxu1 %v2509_v27 }
 0x2d6   : > { %3876 = vmatpush3.bf16.msra.mxu1 %v4220_v9  ;;  %3887 = vmatprep.mubr.bf16.mxu1 %v4833_v40  ;;  %v4225_v40 = vld [vmem:[%s5225_s3 + $0x1f8] sm:$0xff]  }
 0x2d7   : > { %3877 = vmatprep.subr.bf16.mxu1 %v4221_v29 }
 0x2da   : > { %3878 = vmatpush3.bf16.msra.mxu1 %v4221_v29 }
 0x2db   : > { %3879 = vmatprep.subr.bf16.mxu1 %v4222_v28 }
 0x2de   : > { %3880 = vmatpush3.bf16.msra.mxu1 %v4222_v28 }
 0x2df   : > { %3881 = vmatprep.subr.bf16.mxu1 %v4223_v30 }
 0x2e2   : > { %3882 = vmatpush3.bf16.msra.mxu1 %v4223_v30 }
 0x2e3   : > { %3883 = vmatprep.subr.bf16.mxu1 %v4224_v31 }
 0x2e6   : > { %3884 = vmatpush3.bf16.msra.mxu1 %v4224_v31 }
 0x2e7   : > { %3885 = vmatprep.subr.bf16.mxu1 %v4225_v40 }
 0x2ea   : > { %3886 = vmatpush3.bf16.msra.mxu1 %v4225_v40 }
 0x2eb   : > { %3895 = vmatprep.subr.bf16.mxu1 %v4226_v33 }
 0x2ed   : > { %3888 = vmatmul.mubr.bf16.vlgmr.msra.gmra.mrb[0].mxu1 %v4856_v44  ;;  %v4230_v44 = vld [vmem:[%s5225_s3 + $0x220] sm:$0xff]  }
 0x2ee   : > { %3891 = vmatprep.mubr.bf16.mxu1 %v4875_v62  ;;  %3896 = vmatpush3.bf16.msra.mxu1 %v4226_v33  ;;  %v4232_v62 = vld [vmem:[%s5225_s3 + $0x230] sm:$0xff]  }
 0x2ef   : > { %3897 = vmatprep.subr.bf16.mxu1 %v4227_v34 }
 0x2f2   : > { %3898 = vmatpush3.bf16.msra.mxu1 %v4227_v34 }
 0x2f3   : > { %3899 = vmatprep.subr.bf16.mxu1 %v4228_v5 }
 0x2f5   : > { %3892 = vmatmul.mubr.bf16.gmra.mrb[4].mxu1 %v2658_v35 }
 0x2f6   : > { %3900 = vmatpush3.bf16.msra.mxu1 %v4228_v5  ;;  %3911 = vmatprep.mubr.bf16.mxu1 %v4960_v23  ;;  %v3263_v23 = vld [vmem:[%s5226_s4] ss:$0 sm:$0xff] }
 0x2f7   : > { %3901 = vmatprep.subr.bf16.mxu1 %v4229_v37 }
 0x2fa   : > { %3902 = vmatpush3.bf16.msra.mxu1 %v4229_v37 }
 0x2fb   : > { %3903 = vmatprep.subr.bf16.mxu1 %v4230_v44 }
 0x2fe   : > { %3904 = vmatpush3.bf16.msra.mxu1 %v4230_v44 }
 0x2ff   : > { %3905 = vmatprep.subr.bf16.mxu1 %v4231_v55 }
 0x302   : > { %3906 = vmatpush3.bf16.msra.mxu1 %v4231_v55 }
 0x303   : > { %3907 = vmatprep.subr.bf16.mxu1 %v4232_v62 }
 0x306   : > { %3908 = vmatpush3.bf16.msra.mxu1 %v4232_v62 }
 0x307   : > { %3909 = vmatprep.subr.bf16.mxu1 %v4233_v15 }
 0x30a   : > { %3910 = vmatpush3.bf16.msra.mxu1 %v4233_v15 }
 0x30d   : > { %3912 = vmatmul.mubr.bf16.vlgmr.msra.gmra.mrb[0].mxu1 %v4967_v39 }
 0x30e   : > { %3915 = vmatprep.mubr.bf16.mxu1 %v4978_v49 }
 0x315   : > { %3916 = vmatmul.mubr.bf16.gmra.mrb[4].mxu1 %v2807_v22 }
 0x3e0   : > { %v3913_v38 = vpop.f32.mrb[0].mxu1 }
 0x3e1   : > { %v2952_v48 = vmul.f32 %v3913_v38, %v3263_v23  ;;  %v2906_v39 = vpop.f32.mrb[1].mxu1 }
 0x3e2   : > { %v2950_v41 = vmul.f32 %v3263_v23, %v2906_v39  ;;  %v3914_v49 = vpop.f32.mrb[2].mxu1 }
 0x3e3   : > { %v2965_v45 = vadd.f32 %v3264_v43, %v2952_v48  ;;  %v2953_v47 = vmul.f32 %v3914_v49, %v3263_v23  ;;  %v2909_v42 = vpop.f32.mrb[3].mxu1 }
 0x3e4   : > { %v2963_v53 = vadd.f32 %v3264_v43, %v2950_v41  ;;  %v2951_v54 = vmul.f32 %v3263_v23, %v2909_v42 }
 0x3e5   : > { %v2973_v56 = vmax.f32 %v2965_v45, 0.0  ;;  %v2966_v52 = vadd.f32 %v3264_v43, %v2953_v47 }
 0x3e6   : > { %v2971_v0 = vmax.f32 %v2963_v53, 0.0  ;;  %v2964_v17 = vadd.f32 %v3264_v43, %v2951_v54 }
 0x3e7   : > { %2981 = vst [vmem:[%s217_s13 + $0x10] sm:$0xff] %v2973_v56  ;;  %v2974_v63 = vmax.f32 %v2966_v52, 0.0 }
 0x3e8   : > { %2979 = vst [vmem:[%s217_s13] sm:$0xff] %v2971_v0  ;;  %v2972_v8 = vmax.f32 %v2964_v17, 0.0  ;;  %v3917_v10 = vpop.f32.mrb[4].mxu1 }
 0x3e9   : > { %2982 = vst [vmem:[%s217_s13 + $0x18] sm:$0xff] %v2974_v63  ;;  %v2956_v1 = vmul.f32 %v3917_v10, %v3263_v23  ;;  %v2922_v4 = vpop.f32.mrb[5].mxu1 }
 0x3ea   : > { %2980 = vst [vmem:[%s217_s13 + $0x8] sm:$0xff] %v2972_v8  ;;  %v2954_v11 = vmul.f32 %v3263_v23, %v2922_v4  ;;  %v3918_v19 = vpop.f32.mrb[6].mxu1 }
 0x3eb   : > { %v2969_v36 = vadd.f32 %v3264_v43, %v2956_v1  ;;  %v2957_v14 = vmul.f32 %v3918_v19, %v3263_v23  ;;  %v2925_v46 = vpop.f32.mrb[7].mxu1 }
 0x3ec   : > { %v2967_v21 = vadd.f32 %v3264_v43, %v2954_v11  ;;  %v2955_v25 = vmul.f32 %v3263_v23, %v2925_v46 }
 0x3ed   : > { %v2977_v12 = vmax.f32 %v2969_v36, 0.0  ;;  %v2970_v13 = vadd.f32 %v3264_v43, %v2957_v14 }
 0x3ee   : > { %v2975_v32 = vmax.f32 %v2967_v21, 0.0  ;;  %v2968_v50 = vadd.f32 %v3264_v43, %v2955_v25 }
 0x3ef   : > { %2985 = vst [vmem:[%s217_s13 + $0x30] sm:$0xff] %v2977_v12  ;;  %v2978_v51 = vmax.f32 %v2970_v13, 0.0 }
 0x3f0   : > { %2983 = vst [vmem:[%s217_s13 + $0x20] sm:$0xff] %v2975_v32  ;;  %v2976_v57 = vmax.f32 %v2968_v50, 0.0 }
 0x3f1   : > { %2986 = vst [vmem:[%s217_s13 + $0x38] sm:$0xff] %v2978_v51 }
 0x3f2   : > { %2984 = vst [vmem:[%s217_s13 + $0x28] sm:$0xff] %v2976_v57 }
 0x3f3   : > { %4247 = shalt.err (!%p4244_p3)
}
 0x3f4   : > { %s4248_s7 = scalar_lea.hbm %s5175_s23, 1024  ;;  %s4252_s10 = scalar_lea.hbm %s5227_s5, 2048 }
 0x3f5   : > { %p4249_p4 = scmp.ne.s32.totalorder %s5175_s23, %s4248_s7  ;;  %p4253_p9 = scmp.lt.u32.totalorder %s5175_s23, %s5227_s5 }
 0x3f6   : > { %p4254_p10 = scmp.lt.u32.totalorder %s4252_s10, %s4248_s7  ;;  %p4256_p12 = scmp.lt.u32.totalorder %s4248_s7, %s5175_s23 }
 0x3f7   : > { %p4250_p7 = pnand %p4249_p4, %p4370_p5 }
 0x3f8   : > { %p4255_p11 = por %p4254_p10, %p4253_p9 }
 0x3f9   : > { %p4251_p8 = pneg %p4250_p7 }
 0x3fa   : > { %p4257_p13 = por %p4256_p12, %p4255_p11 }
 0x3fc   : > { %p4258_p0 = pnand %p4257_p13, %p4251_p8 }
 0x3fe   : > { %4261 = shalt.err (!%p4258_p0)
}
 0x3ff   : > { %s4300_s13 = smov 128   ;;  %s4301_s14 = smov 8  }
 0x400   : > { %4048 = dma.vmem_to_hbm [thread:$0]  (%p4370_p5), %s5177_s15, 1024, %s5175_s23, %s5181_s22, %s4300_s13, %s4300_s13, %s4301_s14  }
 0x401 PF: > { %p4054_p1 = scmp.ge.s32.totalorder %s4296_s21, 2  ;;  %s3016_s16 = sand.u32 1, %s4284_s18  }
 0x402   : > { %s3017_s17 = scalar_lea.sflag [#allocation4], %s3016_s16 }
 0x403   : > { %p4051_p2 = pnand %p4054_p1, %p4374_p6 }
 0x405   : > { %4279 = dma.done.wait (!%p4051_p2), %s3017_s17, 1024  }
 0x406   : > { %4281 = vsyncadd (!%p4051_p2), %s3017_s17, 4294966272  ;;  %p15_p3 = scmp.ge.s32.totalorder %s4357_s24, 4   ;;  %s5230_s18 = smov %s4288_s19 }
 0x407   : > { %s5231_s19 = smov %s4292_s20  ;;  %s5232_s20 = smov %s4368_s27 }
 0x408   : > { %s5233_s21 = smov %s4357_s24  ;;  %17 = sbr.rel (!%p15_p3) target bundleno = 3 (0x3), region = 80 }
 0x40f   :  { %3022 = vsyncpa [#allocation4], 1 }
 0x410   :  { %3024 = vsyncpa [#allocation4 + $0x1], 1 }

</bundles_post_ra>
